<compile_context>
chip_gen: v7x
topology: tpu7x:2x2x1
jax: 0.10.0
libtpu: 0.0.40
codegen_flags: <defaults>
</compile_context>

<pallas_src>
import math

import numpy as np
import jax
import jax.numpy as jnp
from jax.experimental import pallas as pl
from jax.experimental.pallas import tpu as pltpu

NUM_LAYERS = 6          # mask = [[0,1],[1,0]] * 3  (RLE default)
DIM = 2
HID = 64
NEG_SLOPE = 0.01        # nn.LeakyReLU default
LOG2PI = math.log(2.0 * math.pi)


def _leaky(h):
    # leaky_relu(h) == max(h, slope*h) for 0 < slope < 1 (mul+max, 2 VALU ops).
    return jnp.maximum(h, NEG_SLOPE * h)


def _round_up(a, b):
    return ((a + b - 1) // b) * b


def _device_kind():
    try:
        return jax.devices()[0].device_kind.lower()
    except Exception:
        return ""


def _make_kernel(kept_pattern, compute_dtype):
    """kept_pattern[i] is the feature index kept (copied) by coupling layer i.

    compute_dtype is the dtype of the (128, TN) activation chain (bf16 on
    v6e/v7x whose VALUs are bf16-native, f32 on v5e-class chips).  The flow
    state z0/z1, the per-layer s/t rows, exp/tanh and the log-det stay f32.
    """
    cdt = compute_dtype

    def kernel(x_ref, ab_ref, w2_ref, a3_ref, b3_ref, logp_ref):
        # x_ref: (2, TN) -- batch on lanes.
        z0 = x_ref[0:1, :].astype(jnp.float32)            # (1, TN)
        z1 = x_ref[1:2, :].astype(jnp.float32)            # (1, TN)
        logdet = jnp.zeros_like(z0)

        for i in reversed(range(len(kept_pattern))):      # static unroll (6 layers)
            kept = kept_pattern[i]
            zk = z1 if kept == 1 else z0                  # identity (masked) feature
            za = z0 if kept == 1 else z1                  # transformed feature

            ab = ab_ref[i].astype(cdt)                    # (128, 3) fused layer-1 params
            a1 = ab[:, 0:1]                               # fused first-layer weights
            b1 = ab[:, 1:2]                               # fused first-layer bias
            b2 = ab[:, 2:3]                               # fused hidden-layer bias

            # Fused first layer: rank-1 FMA on the VPU (input has one nonzero feat).
            h = _leaky(a1 * zk.astype(cdt) + b1)          # (128, TN) cdt
            # Fused hidden layer: block-diag(s, t) 128x128 bf16 matmul on the MXU.
            h = jnp.dot(w2_ref[i], h.astype(jnp.bfloat16),
                        preferred_element_type=jnp.float32)      # (128, TN) f32
            h = _leaky(h.astype(cdt) + b2)                # (128, TN) cdt
            # Fused output layer: rows 0/1 of st are s_active / t_active (un-biased).
            st = jnp.dot(a3_ref[i], h.astype(jnp.bfloat16),
                         preferred_element_type=jnp.float32)     # (8, TN) f32

            # Output biases: two SMEM scalars per layer, added to the sliced
            # rows (avoids an (8, TN) broadcast bias add).
            s = jnp.tanh(st[0:1, :] + b3_ref[i, 0])       # (1, TN) f32
            t = st[1:2, :] + b3_ref[i, 1]                 # (1, TN) f32

            za = (za - t) * jnp.exp(-s)                   # inverse coupling update
            logdet = logdet - s                           # s is zero on the kept feat
            if kept == 1:
                z0 = za
            else:
                z1 = za

        # MultivariateNormal(0, I_2).log_prob(z) = -0.5*||z||^2 - log(2*pi)
        logp_ref[...] = (-0.5 * (z0 * z0 + z1 * z1) - LOG2PI + logdet
                         ).astype(logp_ref.dtype)

    return kernel


def pack_params(params, kept_pattern):
    """Pack the 12 raw parameter arrays into 4 fused, layer-stacked arrays.

    raw layout: weights are (L, in, out) (PyTorch Linear weight transposed),
    biases are (L, out).

      ab : (L, 128, 3) f32   columns [a1 | b1 | b2] = fused s/t first-layer
           params (lane dim pads 3->128 in VMEM; ~384 KiB, grid-invariant).
      w2 : (L, 128, 128) bf16 block-diag(sW2^T, tW2^T)        -- MXU operand
      a3 : (L, 8, 128)   bf16 rows 0/1 = active s/t output rows -- MXU operand
      b3 : (L, 2)        f32  active s/t output biases (scalars, live in SMEM)
    """
    sW1, sb1, sW2, sb2, sW3, sb3, tW1, tb1, tW2, tb2, tW3, tb3 = params
    L = sW1.shape[0]
    zero_h = jnp.zeros((HID, HID), jnp.float32)

    ab_l, w2_l, a3_l, b3_l = [], [], [], []
    for i in range(L):
        kept = kept_pattern[i]
        active = 1 - kept
        # First layer: only the "kept" input column matters (the other input is 0).
        a1 = jnp.concatenate([sW1[i, kept, :], tW1[i, kept, :]])            # (128,)
        b1 = jnp.concatenate([sb1[i], tb1[i]])                              # (128,)
        b2 = jnp.concatenate([sb2[i], tb2[i]])                              # (128,)
        ab_l.append(jnp.stack([a1, b1, b2], axis=-1))                       # (128, 3)
        # Hidden layer: block-diagonal (out,in)-layout matmul W @ h.
        w2_l.append(jnp.block([[sW2[i].T, zero_h],
                               [zero_h, tW2[i].T]]))                        # (128, 128)
        # Output layer: only the "active" output row of each net is used.
        a3 = jnp.zeros((8, 2 * HID), jnp.float32)
        a3 = a3.at[0, :HID].set(sW3[i][:, active])
        a3 = a3.at[1, HID:].set(tW3[i][:, active])
        a3_l.append(a3)                                                     # (8, 128)
        b3_l.append(jnp.stack([sb3[i][active], tb3[i][active]]))            # (2,)

    return (jnp.stack(ab_l).astype(jnp.float32),
            jnp.stack(w2_l).astype(jnp.bfloat16),
            jnp.stack(a3_l).astype(jnp.bfloat16),
            jnp.stack(b3_l).astype(jnp.float32))


def realnvp_log_prob(x, packed_params, kept_pattern, *, tile_n=None,
                     compute_dtype=None):
    """log_prob(x) of the RealNVP flow; x is (N, 2) float32."""
    N = int(x.shape[0])
    ab, w2, a3, b3 = packed_params
    kind = _device_kind()

    if compute_dtype is None:
        # v5e-and-older VPUs/EUPs have no native bf16 elementwise: keep the
        # (128, TN) chain in f32 there; bf16 on v6e / v7x.
        compute_dtype = (jnp.float32
                         if any(g in kind for g in ("v2", "v3", "v4", "v5"))
                         else jnp.bfloat16)
    compute_dtype = np.dtype(compute_dtype)

    if tile_n is None:
        # Compute-bound (~210K flops / 12 HBM bytes per element): big tiles to
        # amortize the ~0.35us per-grid-step overhead. VMEM stays a few MiB.
        tile_n = 2048 if compute_dtype == np.dtype(jnp.float32) else 4096

    # Batch tile: multiple of 128 (lane width).  Rebalance the padded batch
    # evenly over the grid steps, and force an even step count on dual-TC
    # chips (v7x) so dimension_semantics=("parallel",) shards evenly.
    n128 = _round_up(max(N, 1), 128)
    tile_max = max(128, min(_round_up(tile_n, 128), n128))
    steps = -(-n128 // tile_max)
    if ("v7" in kind or "7x" in kind) and n128 > 128 and steps % 2 == 1:
        steps += 1
    tile_n = _round_up(-(-n128 // steps), 128)
    n_pad = steps * tile_n

    # Transposed, zero-padded input: (2, N_pad) with batch on the lane axis.
    x_t = jnp.zeros((DIM, n_pad), jnp.float32).at[:, :N].set(
        jnp.asarray(x, jnp.float32).T)

    # Advisory cost estimate so XLA overlaps the wrapper-side transpose/pad and
    # the final slice with this compute-heavy kernel.
    flops_per_elem = 2 * NUM_LAYERS * (2 * HID * 2 * HID + 8 * 2 * HID + 2 * HID)
    weight_bytes = sum(int(np.prod(a.shape)) * a.dtype.itemsize
                       for a in (ab, w2, a3, b3))
    cost = pl.CostEstimate(
        flops=int(flops_per_elem) * n_pad,
        transcendentals=2 * NUM_LAYERS * n_pad,
        bytes_accessed=(DIM + 1) * 4 * n_pad + weight_bytes,
    )

    out = pl.pallas_call(
        _make_kernel(tuple(int(k) for k in kept_pattern), compute_dtype),
        out_shape=jax.ShapeDtypeStruct((1, n_pad), jnp.float32),
        grid=(steps,),
        in_specs=[
            pl.BlockSpec((DIM, tile_n), lambda i: (0, i)),
            pl.BlockSpec(ab.shape, lambda i: (0, 0, 0)),
            pl.BlockSpec(w2.shape, lambda i: (0, 0, 0)),
            pl.BlockSpec(a3.shape, lambda i: (0, 0, 0)),
            pl.BlockSpec(memory_space=pltpu.MemorySpace.SMEM),   # b3 scalars
        ],
        out_specs=pl.BlockSpec((1, tile_n), lambda i: (0, i)),
        compiler_params=pltpu.CompilerParams(
            dimension_semantics=("parallel",)),
        cost_estimate=cost,
    )(x_t, ab, w2, a3, b3)
    return out[0, :N]


def init_params(key):
    """Deterministic synthetic init (xavier_uniform gain=0.01 for weights,
    PyTorch-Linear-style uniform for biases). Weights stored as (L, in, out)."""
    keys = jax.random.split(key, 12)

    def xavier(k, shape, gain=0.01):
        fan_in, fan_out = shape[-2], shape[-1]
        bound = gain * math.sqrt(6.0 / (fan_in + fan_out))
        return jax.random.uniform(k, shape, jnp.float32, -bound, bound)

    def bias(k, shape, fan_in):
        bound = 1.0 / math.sqrt(fan_in)
        return jax.random.uniform(k, shape, jnp.float32, -bound, bound)

    sW1 = xavier(keys[0], (NUM_LAYERS, DIM, HID))
    sW2 = xavier(keys[1], (NUM_LAYERS, HID, HID))
    sW3 = xavier(keys[2], (NUM_LAYERS, HID, DIM))
    tW1 = xavier(keys[3], (NUM_LAYERS, DIM, HID))
    tW2 = xavier(keys[4], (NUM_LAYERS, HID, HID))
    tW3 = xavier(keys[5], (NUM_LAYERS, HID, DIM))
    sb1 = bias(keys[6], (NUM_LAYERS, HID), DIM)
    sb2 = bias(keys[7], (NUM_LAYERS, HID), HID)
    sb3 = bias(keys[8], (NUM_LAYERS, DIM), HID)
    tb1 = bias(keys[9], (NUM_LAYERS, HID), DIM)
    tb2 = bias(keys[10], (NUM_LAYERS, HID), HID)
    tb3 = bias(keys[11], (NUM_LAYERS, DIM), HID)
    return (sW1, sb1, sW2, sb2, sW3, sb3, tW1, tb1, tW2, tb2, tW3, tb3)


def reference_log_prob(x, mask, params):
    """Pure-JAX reference mirroring RealNVP.log_prob / backward_p."""
    sW1, sb1, sW2, sb2, sW3, sb3, tW1, tb1, tW2, tb2, tW3, tb3 = params
    z = x
    logdet = jnp.zeros((x.shape[0],), jnp.float32)
    for i in reversed(range(NUM_LAYERS)):
        m = mask[i]
        om = 1.0 - m
        z_ = z * m
        h = jax.nn.leaky_relu(z_ @ sW1[i] + sb1[i], NEG_SLOPE)
        h = jax.nn.leaky_relu(h @ sW2[i] + sb2[i], NEG_SLOPE)
        s = jnp.tanh(h @ sW3[i] + sb3[i]) * om
        g = jax.nn.leaky_relu(z_ @ tW1[i] + tb1[i], NEG_SLOPE)
        g = jax.nn.leaky_relu(g @ tW2[i] + tb2[i], NEG_SLOPE)
        t = (g @ tW3[i] + tb3[i]) * om
        z = om * (z - t) * jnp.exp(-s) + z_
        logdet = logdet - jnp.sum(s, axis=1)
    return -0.5 * jnp.sum(z * z, axis=1) - LOG2PI + logdet


if __name__ == "__main__":
    key = jax.random.PRNGKey(0)
    k_x, k_p = jax.random.split(key)

    N = 64
    x = jax.random.normal(k_x, (N, DIM), jnp.float32)
    mask = jnp.array([[0.0, 1.0], [1.0, 0.0]] * 3, jnp.float32)  # (6, 2)
    params = init_params(k_p)

    # Static per-layer kept-feature index derived from the (concrete) mask.
    kept_pattern = tuple(int(v) for v in np.argmax(np.asarray(mask), axis=1))
    packed = pack_params(params, kept_pattern)

    logp = realnvp_log_prob(x, packed, kept_pattern)
    jax.block_until_ready(logp)

    ref = reference_log_prob(x, mask, params)
    assert logp.shape == (N,)
    # Tolerance covers bf16 MXU operands (+ bf16 VPU chain on v6e/v7x) vs the
    # f32 XLA reference; with the gain=0.01 init the end-to-end error is ~1e-3.
    assert jnp.allclose(logp, ref, rtol=5e-3, atol=5e-3), (logp, ref)
    print("KERNEL_OK")
</pallas_src>

<mosaic_0001>
module attributes {stable_mosaic.version = 11 : i64} {
  func.func @kernel(%arg0: i32, %arg1: memref<2x128xf32, #tpu.memory_space<vmem>>, %arg2: memref<6x128x3xf32, #tpu.memory_space<vmem>>, %arg3: memref<6x128x128xbf16, #tpu.memory_space<vmem>>, %arg4: memref<6x8x128xbf16, #tpu.memory_space<vmem>>, %arg5: memref<6x2xf32, #tpu.memory_space<smem>>, %arg6: memref<1x128xf32, #tpu.memory_space<vmem>>) attributes {dimension_semantics = [#tpu.dimension_semantics<parallel>], iteration_bounds = array<i64: 1>, scalar_prefetch = 0 : i64, scratch_operands = 0 : i64, tpu.core_type = #tpu.core_type<tc>, window_params = [{transform_indices = @transform_0, window_bounds = array<i64: 2, 128>}, {pipeline_mode = #tpu.pipeline_mode<synchronous>, transform_indices = @transform_1, window_bounds = array<i64: 6, 128, 3>}, {pipeline_mode = #tpu.pipeline_mode<synchronous>, transform_indices = @transform_2, window_bounds = array<i64: 6, 128, 128>}, {pipeline_mode = #tpu.pipeline_mode<synchronous>, transform_indices = @transform_3, window_bounds = array<i64: 6, 8, 128>}, {transform_indices = @transform_4, window_bounds = array<i64: 6, 2>}, {transform_indices = @transform_5, window_bounds = array<i64: 1, 128>}]} {
    %c0 = arith.constant 0 : index
    %c0_0 = arith.constant 0 : index
    %0 = vector.load %arg1[%c0, %c0_0] : memref<2x128xf32, #tpu.memory_space<vmem>>, vector<1x128xf32>
    %c1 = arith.constant 1 : index
    %c0_1 = arith.constant 0 : index
    %1 = vector.load %arg1[%c1, %c0_1] : memref<2x128xf32, #tpu.memory_space<vmem>>, vector<1x128xf32>
    %cst = arith.constant 0.000000e+00 : f32
    %2 = vector.broadcast %cst : f32 to vector<1x128xf32>
    %c5 = arith.constant 5 : index
    %c0_2 = arith.constant 0 : index
    %c0_3 = arith.constant 0 : index
    %3 = vector.load %arg2[%c5, %c0_2, %c0_3] : memref<6x128x3xf32, #tpu.memory_space<vmem>>, vector<1x128x3xf32>
    %4 = vector.shape_cast %3 : vector<1x128x3xf32> to vector<128x3xf32>
    %5 = arith.truncf %4 : vector<128x3xf32> to vector<128x3xbf16>
    %6 = vector.extract_strided_slice %5 {offsets = [0, 0], sizes = [128, 1], strides = [1, 1]} : vector<128x3xbf16> to vector<128x1xbf16>
    %7 = vector.extract_strided_slice %5 {offsets = [0, 1], sizes = [128, 1], strides = [1, 1]} : vector<128x3xbf16> to vector<128x1xbf16>
    %8 = vector.extract_strided_slice %5 {offsets = [0, 2], sizes = [128, 1], strides = [1, 1]} : vector<128x3xbf16> to vector<128x1xbf16>
    %9 = arith.truncf %0 : vector<1x128xf32> to vector<1x128xbf16>
    %10 = vector.broadcast %6 : vector<128x1xbf16> to vector<128x128xbf16>
    %11 = vector.broadcast %9 : vector<1x128xbf16> to vector<128x128xbf16>
    %12 = arith.mulf %10, %11 : vector<128x128xbf16>
    %13 = vector.broadcast %7 : vector<128x1xbf16> to vector<128x128xbf16>
    %14 = arith.addf %12, %13 : vector<128x128xbf16>
    %cst_4 = arith.constant 1.000980e-02 : bf16
    %15 = vector.broadcast %cst_4 : bf16 to vector<128x128xbf16>
    %16 = arith.mulf %15, %14 : vector<128x128xbf16>
    %17 = arith.maximumf %14, %16 : vector<128x128xbf16>
    %c5_5 = arith.constant 5 : index
    %c0_6 = arith.constant 0 : index
    %c0_7 = arith.constant 0 : index
    %18 = vector.load %arg3[%c5_5, %c0_6, %c0_7] : memref<6x128x128xbf16, #tpu.memory_space<vmem>>, vector<1x128x128xbf16>
    %19 = vector.shape_cast %18 : vector<1x128x128xbf16> to vector<128x128xbf16>
    %cst_8 = arith.constant dense<0.000000e+00> : vector<128x128xf32>
    %20 = tpu.matmul %19, %17, %cst_8 {dimension_numbers = #tpu.dot_dimension_numbers<[1], [0], [0], [1], [0, 0, 1, 1], [], []>} : vector<128x128xbf16>, vector<128x128xbf16>, vector<128x128xf32> -> vector<128x128xf32>
    %21 = arith.truncf %20 : vector<128x128xf32> to vector<128x128xbf16>
    %22 = vector.broadcast %8 : vector<128x1xbf16> to vector<128x128xbf16>
    %23 = arith.addf %21, %22 : vector<128x128xbf16>
    %cst_9 = arith.constant 1.000980e-02 : bf16
    %24 = vector.broadcast %cst_9 : bf16 to vector<128x128xbf16>
    %25 = arith.mulf %24, %23 : vector<128x128xbf16>
    %26 = arith.maximumf %23, %25 : vector<128x128xbf16>
    %c5_10 = arith.constant 5 : index
    %c0_11 = arith.constant 0 : index
    %c0_12 = arith.constant 0 : index
    %27 = vector.load %arg4[%c5_10, %c0_11, %c0_12] : memref<6x8x128xbf16, #tpu.memory_space<vmem>>, vector<1x8x128xbf16>
    %28 = vector.shape_cast %27 : vector<1x8x128xbf16> to vector<8x128xbf16>
    %cst_13 = arith.constant dense<0.000000e+00> : vector<8x128xf32>
    %29 = tpu.matmul %28, %26, %cst_13 {dimension_numbers = #tpu.dot_dimension_numbers<[1], [0], [0], [1], [0, 0, 1, 1], [], []>} : vector<8x128xbf16>, vector<128x128xbf16>, vector<8x128xf32> -> vector<8x128xf32>
    %30 = vector.extract_strided_slice %29 {offsets = [0, 0], sizes = [1, 128], strides = [1, 1]} : vector<8x128xf32> to vector<1x128xf32>
    %c5_14 = arith.constant 5 : index
    %c0_15 = arith.constant 0 : index
    %31 = memref.load %arg5[%c5_14, %c0_15] : memref<6x2xf32, #tpu.memory_space<smem>>
    %32 = vector.broadcast %31 : f32 to vector<1x128xf32>
    %33 = arith.addf %30, %32 : vector<1x128xf32>
    %34 = math.tanh %33 : vector<1x128xf32>
    %35 = vector.extract_strided_slice %29 {offsets = [1, 0], sizes = [1, 128], strides = [1, 1]} : vector<8x128xf32> to vector<1x128xf32>
    %c5_16 = arith.constant 5 : index
    %c1_17 = arith.constant 1 : index
    %36 = memref.load %arg5[%c5_16, %c1_17] : memref<6x2xf32, #tpu.memory_space<smem>>
    %37 = vector.broadcast %36 : f32 to vector<1x128xf32>
    %38 = arith.addf %35, %37 : vector<1x128xf32>
    %39 = arith.subf %1, %38 : vector<1x128xf32>
    %cst_18 = arith.constant 0.000000e+00 : f32
    %40 = vector.broadcast %cst_18 : f32 to vector<1x128xf32>
    %41 = arith.subf %40, %34 : vector<1x128xf32>
    %42 = math.exp %41 : vector<1x128xf32>
    %43 = arith.mulf %39, %42 : vector<1x128xf32>
    %44 = arith.subf %2, %34 : vector<1x128xf32>
    %c4 = arith.constant 4 : index
    %c0_19 = arith.constant 0 : index
    %c0_20 = arith.constant 0 : index
    %45 = vector.load %arg2[%c4, %c0_19, %c0_20] : memref<6x128x3xf32, #tpu.memory_space<vmem>>, vector<1x128x3xf32>
    %46 = vector.shape_cast %45 : vector<1x128x3xf32> to vector<128x3xf32>
    %47 = arith.truncf %46 : vector<128x3xf32> to vector<128x3xbf16>
    %48 = vector.extract_strided_slice %47 {offsets = [0, 0], sizes = [128, 1], strides = [1, 1]} : vector<128x3xbf16> to vector<128x1xbf16>
    %49 = vector.extract_strided_slice %47 {offsets = [0, 1], sizes = [128, 1], strides = [1, 1]} : vector<128x3xbf16> to vector<128x1xbf16>
    %50 = vector.extract_strided_slice %47 {offsets = [0, 2], sizes = [128, 1], strides = [1, 1]} : vector<128x3xbf16> to vector<128x1xbf16>
    %51 = arith.truncf %43 : vector<1x128xf32> to vector<1x128xbf16>
    %52 = vector.broadcast %48 : vector<128x1xbf16> to vector<128x128xbf16>
    %53 = vector.broadcast %51 : vector<1x128xbf16> to vector<128x128xbf16>
    %54 = arith.mulf %52, %53 : vector<128x128xbf16>
    %55 = vector.broadcast %49 : vector<128x1xbf16> to vector<128x128xbf16>
    %56 = arith.addf %54, %55 : vector<128x128xbf16>
    %cst_21 = arith.constant 1.000980e-02 : bf16
    %57 = vector.broadcast %cst_21 : bf16 to vector<128x128xbf16>
    %58 = arith.mulf %57, %56 : vector<128x128xbf16>
    %59 = arith.maximumf %56, %58 : vector<128x128xbf16>
    %c4_22 = arith.constant 4 : index
    %c0_23 = arith.constant 0 : index
    %c0_24 = arith.constant 0 : index
    %60 = vector.load %arg3[%c4_22, %c0_23, %c0_24] : memref<6x128x128xbf16, #tpu.memory_space<vmem>>, vector<1x128x128xbf16>
    %61 = vector.shape_cast %60 : vector<1x128x128xbf16> to vector<128x128xbf16>
    %cst_25 = arith.constant dense<0.000000e+00> : vector<128x128xf32>
    %62 = tpu.matmul %61, %59, %cst_25 {dimension_numbers = #tpu.dot_dimension_numbers<[1], [0], [0], [1], [0, 0, 1, 1], [], []>} : vector<128x128xbf16>, vector<128x128xbf16>, vector<128x128xf32> -> vector<128x128xf32>
    %63 = arith.truncf %62 : vector<128x128xf32> to vector<128x128xbf16>
    %64 = vector.broadcast %50 : vector<128x1xbf16> to vector<128x128xbf16>
    %65 = arith.addf %63, %64 : vector<128x128xbf16>
    %cst_26 = arith.constant 1.000980e-02 : bf16
    %66 = vector.broadcast %cst_26 : bf16 to vector<128x128xbf16>
    %67 = arith.mulf %66, %65 : vector<128x128xbf16>
    %68 = arith.maximumf %65, %67 : vector<128x128xbf16>
    %c4_27 = arith.constant 4 : index
    %c0_28 = arith.constant 0 : index
    %c0_29 = arith.constant 0 : index
    %69 = vector.load %arg4[%c4_27, %c0_28, %c0_29] : memref<6x8x128xbf16, #tpu.memory_space<vmem>>, vector<1x8x128xbf16>
    %70 = vector.shape_cast %69 : vector<1x8x128xbf16> to vector<8x128xbf16>
    %cst_30 = arith.constant dense<0.000000e+00> : vector<8x128xf32>
    %71 = tpu.matmul %70, %68, %cst_30 {dimension_numbers = #tpu.dot_dimension_numbers<[1], [0], [0], [1], [0, 0, 1, 1], [], []>} : vector<8x128xbf16>, vector<128x128xbf16>, vector<8x128xf32> -> vector<8x128xf32>
    %72 = vector.extract_strided_slice %71 {offsets = [0, 0], sizes = [1, 128], strides = [1, 1]} : vector<8x128xf32> to vector<1x128xf32>
    %c4_31 = arith.constant 4 : index
    %c0_32 = arith.constant 0 : index
    %73 = memref.load %arg5[%c4_31, %c0_32] : memref<6x2xf32, #tpu.memory_space<smem>>
    %74 = vector.broadcast %73 : f32 to vector<1x128xf32>
    %75 = arith.addf %72, %74 : vector<1x128xf32>
    %76 = math.tanh %75 : vector<1x128xf32>
    %77 = vector.extract_strided_slice %71 {offsets = [1, 0], sizes = [1, 128], strides = [1, 1]} : vector<8x128xf32> to vector<1x128xf32>
    %c4_33 = arith.constant 4 : index
    %c1_34 = arith.constant 1 : index
    %78 = memref.load %arg5[%c4_33, %c1_34] : memref<6x2xf32, #tpu.memory_space<smem>>
    %79 = vector.broadcast %78 : f32 to vector<1x128xf32>
    %80 = arith.addf %77, %79 : vector<1x128xf32>
    %81 = arith.subf %0, %80 : vector<1x128xf32>
    %cst_35 = arith.constant 0.000000e+00 : f32
    %82 = vector.broadcast %cst_35 : f32 to vector<1x128xf32>
    %83 = arith.subf %82, %76 : vector<1x128xf32>
    %84 = math.exp %83 : vector<1x128xf32>
    %85 = arith.mulf %81, %84 : vector<1x128xf32>
    %86 = arith.subf %44, %76 : vector<1x128xf32>
    %c3 = arith.constant 3 : index
    %c0_36 = arith.constant 0 : index
    %c0_37 = arith.constant 0 : index
    %87 = vector.load %arg2[%c3, %c0_36, %c0_37] : memref<6x128x3xf32, #tpu.memory_space<vmem>>, vector<1x128x3xf32>
    %88 = vector.shape_cast %87 : vector<1x128x3xf32> to vector<128x3xf32>
    %89 = arith.truncf %88 : vector<128x3xf32> to vector<128x3xbf16>
    %90 = vector.extract_strided_slice %89 {offsets = [0, 0], sizes = [128, 1], strides = [1, 1]} : vector<128x3xbf16> to vector<128x1xbf16>
    %91 = vector.extract_strided_slice %89 {offsets = [0, 1], sizes = [128, 1], strides = [1, 1]} : vector<128x3xbf16> to vector<128x1xbf16>
    %92 = vector.extract_strided_slice %89 {offsets = [0, 2], sizes = [128, 1], strides = [1, 1]} : vector<128x3xbf16> to vector<128x1xbf16>
    %93 = arith.truncf %85 : vector<1x128xf32> to vector<1x128xbf16>
    %94 = vector.broadcast %90 : vector<128x1xbf16> to vector<128x128xbf16>
    %95 = vector.broadcast %93 : vector<1x128xbf16> to vector<128x128xbf16>
    %96 = arith.mulf %94, %95 : vector<128x128xbf16>
    %97 = vector.broadcast %91 : vector<128x1xbf16> to vector<128x128xbf16>
    %98 = arith.addf %96, %97 : vector<128x128xbf16>
    %cst_38 = arith.constant 1.000980e-02 : bf16
    %99 = vector.broadcast %cst_38 : bf16 to vector<128x128xbf16>
    %100 = arith.mulf %99, %98 : vector<128x128xbf16>
    %101 = arith.maximumf %98, %100 : vector<128x128xbf16>
    %c3_39 = arith.constant 3 : index
    %c0_40 = arith.constant 0 : index
    %c0_41 = arith.constant 0 : index
    %102 = vector.load %arg3[%c3_39, %c0_40, %c0_41] : memref<6x128x128xbf16, #tpu.memory_space<vmem>>, vector<1x128x128xbf16>
    %103 = vector.shape_cast %102 : vector<1x128x128xbf16> to vector<128x128xbf16>
    %cst_42 = arith.constant dense<0.000000e+00> : vector<128x128xf32>
    %104 = tpu.matmul %103, %101, %cst_42 {dimension_numbers = #tpu.dot_dimension_numbers<[1], [0], [0], [1], [0, 0, 1, 1], [], []>} : vector<128x128xbf16>, vector<128x128xbf16>, vector<128x128xf32> -> vector<128x128xf32>
    %105 = arith.truncf %104 : vector<128x128xf32> to vector<128x128xbf16>
    %106 = vector.broadcast %92 : vector<128x1xbf16> to vector<128x128xbf16>
    %107 = arith.addf %105, %106 : vector<128x128xbf16>
    %cst_43 = arith.constant 1.000980e-02 : bf16
    %108 = vector.broadcast %cst_43 : bf16 to vector<128x128xbf16>
    %109 = arith.mulf %108, %107 : vector<128x128xbf16>
    %110 = arith.maximumf %107, %109 : vector<128x128xbf16>
    %c3_44 = arith.constant 3 : index
    %c0_45 = arith.constant 0 : index
    %c0_46 = arith.constant 0 : index
    %111 = vector.load %arg4[%c3_44, %c0_45, %c0_46] : memref<6x8x128xbf16, #tpu.memory_space<vmem>>, vector<1x8x128xbf16>
    %112 = vector.shape_cast %111 : vector<1x8x128xbf16> to vector<8x128xbf16>
    %cst_47 = arith.constant dense<0.000000e+00> : vector<8x128xf32>
    %113 = tpu.matmul %112, %110, %cst_47 {dimension_numbers = #tpu.dot_dimension_numbers<[1], [0], [0], [1], [0, 0, 1, 1], [], []>} : vector<8x128xbf16>, vector<128x128xbf16>, vector<8x128xf32> -> vector<8x128xf32>
    %114 = vector.extract_strided_slice %113 {offsets = [0, 0], sizes = [1, 128], strides = [1, 1]} : vector<8x128xf32> to vector<1x128xf32>
    %c3_48 = arith.constant 3 : index
    %c0_49 = arith.constant 0 : index
    %115 = memref.load %arg5[%c3_48, %c0_49] : memref<6x2xf32, #tpu.memory_space<smem>>
    %116 = vector.broadcast %115 : f32 to vector<1x128xf32>
    %117 = arith.addf %114, %116 : vector<1x128xf32>
    %118 = math.tanh %117 : vector<1x128xf32>
    %119 = vector.extract_strided_slice %113 {offsets = [1, 0], sizes = [1, 128], strides = [1, 1]} : vector<8x128xf32> to vector<1x128xf32>
    %c3_50 = arith.constant 3 : index
    %c1_51 = arith.constant 1 : index
    %120 = memref.load %arg5[%c3_50, %c1_51] : memref<6x2xf32, #tpu.memory_space<smem>>
    %121 = vector.broadcast %120 : f32 to vector<1x128xf32>
    %122 = arith.addf %119, %121 : vector<1x128xf32>
    %123 = arith.subf %43, %122 : vector<1x128xf32>
    %cst_52 = arith.constant 0.000000e+00 : f32
    %124 = vector.broadcast %cst_52 : f32 to vector<1x128xf32>
    %125 = arith.subf %124, %118 : vector<1x128xf32>
    %126 = math.exp %125 : vector<1x128xf32>
    %127 = arith.mulf %123, %126 : vector<1x128xf32>
    %128 = arith.subf %86, %118 : vector<1x128xf32>
    %c2 = arith.constant 2 : index
    %c0_53 = arith.constant 0 : index
    %c0_54 = arith.constant 0 : index
    %129 = vector.load %arg2[%c2, %c0_53, %c0_54] : memref<6x128x3xf32, #tpu.memory_space<vmem>>, vector<1x128x3xf32>
    %130 = vector.shape_cast %129 : vector<1x128x3xf32> to vector<128x3xf32>
    %131 = arith.truncf %130 : vector<128x3xf32> to vector<128x3xbf16>
    %132 = vector.extract_strided_slice %131 {offsets = [0, 0], sizes = [128, 1], strides = [1, 1]} : vector<128x3xbf16> to vector<128x1xbf16>
    %133 = vector.extract_strided_slice %131 {offsets = [0, 1], sizes = [128, 1], strides = [1, 1]} : vector<128x3xbf16> to vector<128x1xbf16>
    %134 = vector.extract_strided_slice %131 {offsets = [0, 2], sizes = [128, 1], strides = [1, 1]} : vector<128x3xbf16> to vector<128x1xbf16>
    %135 = arith.truncf %127 : vector<1x128xf32> to vector<1x128xbf16>
    %136 = vector.broadcast %132 : vector<128x1xbf16> to vector<128x128xbf16>
    %137 = vector.broadcast %135 : vector<1x128xbf16> to vector<128x128xbf16>
    %138 = arith.mulf %136, %137 : vector<128x128xbf16>
    %139 = vector.broadcast %133 : vector<128x1xbf16> to vector<128x128xbf16>
    %140 = arith.addf %138, %139 : vector<128x128xbf16>
    %cst_55 = arith.constant 1.000980e-02 : bf16
    %141 = vector.broadcast %cst_55 : bf16 to vector<128x128xbf16>
    %142 = arith.mulf %141, %140 : vector<128x128xbf16>
    %143 = arith.maximumf %140, %142 : vector<128x128xbf16>
    %c2_56 = arith.constant 2 : index
    %c0_57 = arith.constant 0 : index
    %c0_58 = arith.constant 0 : index
    %144 = vector.load %arg3[%c2_56, %c0_57, %c0_58] : memref<6x128x128xbf16, #tpu.memory_space<vmem>>, vector<1x128x128xbf16>
    %145 = vector.shape_cast %144 : vector<1x128x128xbf16> to vector<128x128xbf16>
    %cst_59 = arith.constant dense<0.000000e+00> : vector<128x128xf32>
    %146 = tpu.matmul %145, %143, %cst_59 {dimension_numbers = #tpu.dot_dimension_numbers<[1], [0], [0], [1], [0, 0, 1, 1], [], []>} : vector<128x128xbf16>, vector<128x128xbf16>, vector<128x128xf32> -> vector<128x128xf32>
    %147 = arith.truncf %146 : vector<128x128xf32> to vector<128x128xbf16>
    %148 = vector.broadcast %134 : vector<128x1xbf16> to vector<128x128xbf16>
    %149 = arith.addf %147, %148 : vector<128x128xbf16>
    %cst_60 = arith.constant 1.000980e-02 : bf16
    %150 = vector.broadcast %cst_60 : bf16 to vector<128x128xbf16>
    %151 = arith.mulf %150, %149 : vector<128x128xbf16>
    %152 = arith.maximumf %149, %151 : vector<128x128xbf16>
    %c2_61 = arith.constant 2 : index
    %c0_62 = arith.constant 0 : index
    %c0_63 = arith.constant 0 : index
    %153 = vector.load %arg4[%c2_61, %c0_62, %c0_63] : memref<6x8x128xbf16, #tpu.memory_space<vmem>>, vector<1x8x128xbf16>
    %154 = vector.shape_cast %153 : vector<1x8x128xbf16> to vector<8x128xbf16>
    %cst_64 = arith.constant dense<0.000000e+00> : vector<8x128xf32>
    %155 = tpu.matmul %154, %152, %cst_64 {dimension_numbers = #tpu.dot_dimension_numbers<[1], [0], [0], [1], [0, 0, 1, 1], [], []>} : vector<8x128xbf16>, vector<128x128xbf16>, vector<8x128xf32> -> vector<8x128xf32>
    %156 = vector.extract_strided_slice %155 {offsets = [0, 0], sizes = [1, 128], strides = [1, 1]} : vector<8x128xf32> to vector<1x128xf32>
    %c2_65 = arith.constant 2 : index
    %c0_66 = arith.constant 0 : index
    %157 = memref.load %arg5[%c2_65, %c0_66] : memref<6x2xf32, #tpu.memory_space<smem>>
    %158 = vector.broadcast %157 : f32 to vector<1x128xf32>
    %159 = arith.addf %156, %158 : vector<1x128xf32>
    %160 = math.tanh %159 : vector<1x128xf32>
    %161 = vector.extract_strided_slice %155 {offsets = [1, 0], sizes = [1, 128], strides = [1, 1]} : vector<8x128xf32> to vector<1x128xf32>
    %c2_67 = arith.constant 2 : index
    %c1_68 = arith.constant 1 : index
    %162 = memref.load %arg5[%c2_67, %c1_68] : memref<6x2xf32, #tpu.memory_space<smem>>
    %163 = vector.broadcast %162 : f32 to vector<1x128xf32>
    %164 = arith.addf %161, %163 : vector<1x128xf32>
    %165 = arith.subf %85, %164 : vector<1x128xf32>
    %cst_69 = arith.constant 0.000000e+00 : f32
    %166 = vector.broadcast %cst_69 : f32 to vector<1x128xf32>
    %167 = arith.subf %166, %160 : vector<1x128xf32>
    %168 = math.exp %167 : vector<1x128xf32>
    %169 = arith.mulf %165, %168 : vector<1x128xf32>
    %170 = arith.subf %128, %160 : vector<1x128xf32>
    %c1_70 = arith.constant 1 : index
    %c0_71 = arith.constant 0 : index
    %c0_72 = arith.constant 0 : index
    %171 = vector.load %arg2[%c1_70, %c0_71, %c0_72] : memref<6x128x3xf32, #tpu.memory_space<vmem>>, vector<1x128x3xf32>
    %172 = vector.shape_cast %171 : vector<1x128x3xf32> to vector<128x3xf32>
    %173 = arith.truncf %172 : vector<128x3xf32> to vector<128x3xbf16>
    %174 = vector.extract_strided_slice %173 {offsets = [0, 0], sizes = [128, 1], strides = [1, 1]} : vector<128x3xbf16> to vector<128x1xbf16>
    %175 = vector.extract_strided_slice %173 {offsets = [0, 1], sizes = [128, 1], strides = [1, 1]} : vector<128x3xbf16> to vector<128x1xbf16>
    %176 = vector.extract_strided_slice %173 {offsets = [0, 2], sizes = [128, 1], strides = [1, 1]} : vector<128x3xbf16> to vector<128x1xbf16>
    %177 = arith.truncf %169 : vector<1x128xf32> to vector<1x128xbf16>
    %178 = vector.broadcast %174 : vector<128x1xbf16> to vector<128x128xbf16>
    %179 = vector.broadcast %177 : vector<1x128xbf16> to vector<128x128xbf16>
    %180 = arith.mulf %178, %179 : vector<128x128xbf16>
    %181 = vector.broadcast %175 : vector<128x1xbf16> to vector<128x128xbf16>
    %182 = arith.addf %180, %181 : vector<128x128xbf16>
    %cst_73 = arith.constant 1.000980e-02 : bf16
    %183 = vector.broadcast %cst_73 : bf16 to vector<128x128xbf16>
    %184 = arith.mulf %183, %182 : vector<128x128xbf16>
    %185 = arith.maximumf %182, %184 : vector<128x128xbf16>
    %c1_74 = arith.constant 1 : index
    %c0_75 = arith.constant 0 : index
    %c0_76 = arith.constant 0 : index
    %186 = vector.load %arg3[%c1_74, %c0_75, %c0_76] : memref<6x128x128xbf16, #tpu.memory_space<vmem>>, vector<1x128x128xbf16>
    %187 = vector.shape_cast %186 : vector<1x128x128xbf16> to vector<128x128xbf16>
    %cst_77 = arith.constant dense<0.000000e+00> : vector<128x128xf32>
    %188 = tpu.matmul %187, %185, %cst_77 {dimension_numbers = #tpu.dot_dimension_numbers<[1], [0], [0], [1], [0, 0, 1, 1], [], []>} : vector<128x128xbf16>, vector<128x128xbf16>, vector<128x128xf32> -> vector<128x128xf32>
    %189 = arith.truncf %188 : vector<128x128xf32> to vector<128x128xbf16>
    %190 = vector.broadcast %176 : vector<128x1xbf16> to vector<128x128xbf16>
    %191 = arith.addf %189, %190 : vector<128x128xbf16>
    %cst_78 = arith.constant 1.000980e-02 : bf16
    %192 = vector.broadcast %cst_78 : bf16 to vector<128x128xbf16>
    %193 = arith.mulf %192, %191 : vector<128x128xbf16>
    %194 = arith.maximumf %191, %193 : vector<128x128xbf16>
    %c1_79 = arith.constant 1 : index
    %c0_80 = arith.constant 0 : index
    %c0_81 = arith.constant 0 : index
    %195 = vector.load %arg4[%c1_79, %c0_80, %c0_81] : memref<6x8x128xbf16, #tpu.memory_space<vmem>>, vector<1x8x128xbf16>
    %196 = vector.shape_cast %195 : vector<1x8x128xbf16> to vector<8x128xbf16>
    %cst_82 = arith.constant dense<0.000000e+00> : vector<8x128xf32>
    %197 = tpu.matmul %196, %194, %cst_82 {dimension_numbers = #tpu.dot_dimension_numbers<[1], [0], [0], [1], [0, 0, 1, 1], [], []>} : vector<8x128xbf16>, vector<128x128xbf16>, vector<8x128xf32> -> vector<8x128xf32>
    %198 = vector.extract_strided_slice %197 {offsets = [0, 0], sizes = [1, 128], strides = [1, 1]} : vector<8x128xf32> to vector<1x128xf32>
    %c1_83 = arith.constant 1 : index
    %c0_84 = arith.constant 0 : index
    %199 = memref.load %arg5[%c1_83, %c0_84] : memref<6x2xf32, #tpu.memory_space<smem>>
    %200 = vector.broadcast %199 : f32 to vector<1x128xf32>
    %201 = arith.addf %198, %200 : vector<1x128xf32>
    %202 = math.tanh %201 : vector<1x128xf32>
    %203 = vector.extract_strided_slice %197 {offsets = [1, 0], sizes = [1, 128], strides = [1, 1]} : vector<8x128xf32> to vector<1x128xf32>
    %c1_85 = arith.constant 1 : index
    %c1_86 = arith.constant 1 : index
    %204 = memref.load %arg5[%c1_85, %c1_86] : memref<6x2xf32, #tpu.memory_space<smem>>
    %205 = vector.broadcast %204 : f32 to vector<1x128xf32>
    %206 = arith.addf %203, %205 : vector<1x128xf32>
    %207 = arith.subf %127, %206 : vector<1x128xf32>
    %cst_87 = arith.constant 0.000000e+00 : f32
    %208 = vector.broadcast %cst_87 : f32 to vector<1x128xf32>
    %209 = arith.subf %208, %202 : vector<1x128xf32>
    %210 = math.exp %209 : vector<1x128xf32>
    %211 = arith.mulf %207, %210 : vector<1x128xf32>
    %212 = arith.subf %170, %202 : vector<1x128xf32>
    %c0_88 = arith.constant 0 : index
    %c0_89 = arith.constant 0 : index
    %c0_90 = arith.constant 0 : index
    %213 = vector.load %arg2[%c0_88, %c0_89, %c0_90] : memref<6x128x3xf32, #tpu.memory_space<vmem>>, vector<1x128x3xf32>
    %214 = vector.shape_cast %213 : vector<1x128x3xf32> to vector<128x3xf32>
    %215 = arith.truncf %214 : vector<128x3xf32> to vector<128x3xbf16>
    %216 = vector.extract_strided_slice %215 {offsets = [0, 0], sizes = [128, 1], strides = [1, 1]} : vector<128x3xbf16> to vector<128x1xbf16>
    %217 = vector.extract_strided_slice %215 {offsets = [0, 1], sizes = [128, 1], strides = [1, 1]} : vector<128x3xbf16> to vector<128x1xbf16>
    %218 = vector.extract_strided_slice %215 {offsets = [0, 2], sizes = [128, 1], strides = [1, 1]} : vector<128x3xbf16> to vector<128x1xbf16>
    %219 = arith.truncf %211 : vector<1x128xf32> to vector<1x128xbf16>
    %220 = vector.broadcast %216 : vector<128x1xbf16> to vector<128x128xbf16>
    %221 = vector.broadcast %219 : vector<1x128xbf16> to vector<128x128xbf16>
    %222 = arith.mulf %220, %221 : vector<128x128xbf16>
    %223 = vector.broadcast %217 : vector<128x1xbf16> to vector<128x128xbf16>
    %224 = arith.addf %222, %223 : vector<128x128xbf16>
    %cst_91 = arith.constant 1.000980e-02 : bf16
    %225 = vector.broadcast %cst_91 : bf16 to vector<128x128xbf16>
    %226 = arith.mulf %225, %224 : vector<128x128xbf16>
    %227 = arith.maximumf %224, %226 : vector<128x128xbf16>
    %c0_92 = arith.constant 0 : index
    %c0_93 = arith.constant 0 : index
    %c0_94 = arith.constant 0 : index
    %228 = vector.load %arg3[%c0_92, %c0_93, %c0_94] : memref<6x128x128xbf16, #tpu.memory_space<vmem>>, vector<1x128x128xbf16>
    %229 = vector.shape_cast %228 : vector<1x128x128xbf16> to vector<128x128xbf16>
    %cst_95 = arith.constant dense<0.000000e+00> : vector<128x128xf32>
    %230 = tpu.matmul %229, %227, %cst_95 {dimension_numbers = #tpu.dot_dimension_numbers<[1], [0], [0], [1], [0, 0, 1, 1], [], []>} : vector<128x128xbf16>, vector<128x128xbf16>, vector<128x128xf32> -> vector<128x128xf32>
    %231 = arith.truncf %230 : vector<128x128xf32> to vector<128x128xbf16>
    %232 = vector.broadcast %218 : vector<128x1xbf16> to vector<128x128xbf16>
    %233 = arith.addf %231, %232 : vector<128x128xbf16>
    %cst_96 = arith.constant 1.000980e-02 : bf16
    %234 = vector.broadcast %cst_96 : bf16 to vector<128x128xbf16>
    %235 = arith.mulf %234, %233 : vector<128x128xbf16>
    %236 = arith.maximumf %233, %235 : vector<128x128xbf16>
    %c0_97 = arith.constant 0 : index
    %c0_98 = arith.constant 0 : index
    %c0_99 = arith.constant 0 : index
    %237 = vector.load %arg4[%c0_97, %c0_98, %c0_99] : memref<6x8x128xbf16, #tpu.memory_space<vmem>>, vector<1x8x128xbf16>
    %238 = vector.shape_cast %237 : vector<1x8x128xbf16> to vector<8x128xbf16>
    %cst_100 = arith.constant dense<0.000000e+00> : vector<8x128xf32>
    %239 = tpu.matmul %238, %236, %cst_100 {dimension_numbers = #tpu.dot_dimension_numbers<[1], [0], [0], [1], [0, 0, 1, 1], [], []>} : vector<8x128xbf16>, vector<128x128xbf16>, vector<8x128xf32> -> vector<8x128xf32>
    %240 = vector.extract_strided_slice %239 {offsets = [0, 0], sizes = [1, 128], strides = [1, 1]} : vector<8x128xf32> to vector<1x128xf32>
    %c0_101 = arith.constant 0 : index
    %c0_102 = arith.constant 0 : index
    %241 = memref.load %arg5[%c0_101, %c0_102] : memref<6x2xf32, #tpu.memory_space<smem>>
    %242 = vector.broadcast %241 : f32 to vector<1x128xf32>
    %243 = arith.addf %240, %242 : vector<1x128xf32>
    %244 = math.tanh %243 : vector<1x128xf32>
    %245 = vector.extract_strided_slice %239 {offsets = [1, 0], sizes = [1, 128], strides = [1, 1]} : vector<8x128xf32> to vector<1x128xf32>
    %c0_103 = arith.constant 0 : index
    %c1_104 = arith.constant 1 : index
    %246 = memref.load %arg5[%c0_103, %c1_104] : memref<6x2xf32, #tpu.memory_space<smem>>
    %247 = vector.broadcast %246 : f32 to vector<1x128xf32>
    %248 = arith.addf %245, %247 : vector<1x128xf32>
    %249 = arith.subf %169, %248 : vector<1x128xf32>
    %cst_105 = arith.constant 0.000000e+00 : f32
    %250 = vector.broadcast %cst_105 : f32 to vector<1x128xf32>
    %251 = arith.subf %250, %244 : vector<1x128xf32>
    %252 = math.exp %251 : vector<1x128xf32>
    %253 = arith.mulf %249, %252 : vector<1x128xf32>
    %254 = arith.subf %212, %244 : vector<1x128xf32>
    %255 = arith.mulf %253, %253 : vector<1x128xf32>
    %256 = arith.mulf %211, %211 : vector<1x128xf32>
    %257 = arith.addf %255, %256 : vector<1x128xf32>
    %cst_106 = arith.constant -5.000000e-01 : f32
    %258 = vector.broadcast %cst_106 : f32 to vector<1x128xf32>
    %259 = arith.mulf %258, %257 : vector<1x128xf32>
    %cst_107 = arith.constant 1.83787704 : f32
    %260 = vector.broadcast %cst_107 : f32 to vector<1x128xf32>
    %261 = arith.subf %259, %260 : vector<1x128xf32>
    %262 = arith.addf %261, %254 : vector<1x128xf32>
    %c0_108 = arith.constant 0 : index
    %c0_109 = arith.constant 0 : index
    %263 = vector.load %arg6[%c0_108, %c0_109] : memref<1x128xf32, #tpu.memory_space<vmem>>, vector<1x128xf32>
    tpu.vector_store %arg6[%c0_108, %c0_109], %262 {strides = array<i32>} : memref<1x128xf32, #tpu.memory_space<vmem>>, vector<1x128xf32>,
    return
  }
  func.func @transform_0(%arg0: i32) -> (i32, i32) {
    %c0_i32 = arith.constant 0 : i32
    %c0_i32_0 = arith.constant 0 : i32
    return %c0_i32, %arg0 : i32, i32
  }
  func.func @transform_1(%arg0: i32) -> (i32, i32, i32) {
    %c0_i32 = arith.constant 0 : i32
    %c0_i32_0 = arith.constant 0 : i32
    %c0_i32_1 = arith.constant 0 : i32
    %c0_i32_2 = arith.constant 0 : i32
    return %c0_i32, %c0_i32_0, %c0_i32_1 : i32, i32, i32
  }
  func.func @transform_2(%arg0: i32) -> (i32, i32, i32) {
    %c0_i32 = arith.constant 0 : i32
    %c0_i32_0 = arith.constant 0 : i32
    %c0_i32_1 = arith.constant 0 : i32
    %c0_i32_2 = arith.constant 0 : i32
    return %c0_i32, %c0_i32_0, %c0_i32_1 : i32, i32, i32
  }
  func.func @transform_3(%arg0: i32) -> (i32, i32, i32) {
    %c0_i32 = arith.constant 0 : i32
    %c0_i32_0 = arith.constant 0 : i32
    %c0_i32_1 = arith.constant 0 : i32
    %c0_i32_2 = arith.constant 0 : i32
    return %c0_i32, %c0_i32_0, %c0_i32_1 : i32, i32, i32
  }
  func.func @transform_4(%arg0: i32) -> (i32, i32) {
    %c0_i32 = arith.constant 0 : i32
    %c0_i32_0 = arith.constant 0 : i32
    %c0_i32_1 = arith.constant 0 : i32
    return %c0_i32, %c0_i32_0 : i32, i32
  }
  func.func @transform_5(%arg0: i32) -> (i32, i32) {
    %c0_i32 = arith.constant 0 : i32
    %c0_i32_0 = arith.constant 0 : i32
    return %c0_i32, %arg0 : i32, i32
  }
}

</mosaic_0001>

<bundles_post_ra>
// kernel: tpu_custom_call.1
= control target key start
LH: loop header
LB: loop body
LE: loop exit
PB: predicated region body
PF: predicated region fallthrough
CT: control target
= control target key end

     0   :  { %10 = vsyncpa [#allocation4], 0  ;;  %s4170_s0 = inlined_call_operand.vmem [shape: f32[2,128], index: 0, kind: input, shape index: {}]   ;;  %s4171_s1 = inlined_call_operand.vmem [shape: f32[6,128,3], index: 1, kind: input, shape index: {}]   ;;  %s4172_s2 = inlined_call_operand.vmem [shape: bf16[6,128,128], index: 2, kind: input, shape index: {}]   ;;  %s4173_s3 = inlined_call_operand.vmem [shape: bf16[6,8,128], index: 3, kind: input, shape index: {}]   ;;  %s4174_s4 = inlined_call_operand.vmem [shape: f32[6,2], index: 4, kind: input, shape index: {}]   ;;  %s4175_s5 = inlined_call_operand.hbm [shape: f32[1,128], index: 5, kind: output, shape index: {}]  }
   0x1   :  { %11 = vsyncpa [#allocation3], 0  ;;  %s26_s20 = sshll.u32 %s4174_s4, 4  ;;  %s27_s20 = int_to_ptr.vmem [resolvable:$true] %s26_s20 }
   0x2   :  { %s3421_s21 = scalar_lea.vmem %s27_s20, 128  ;;  %p3426_p1 = scmp.lt.s32.totalorder %s27_s20, %s27_s20 }
   0x3   :  { %p3422_p0 = scmp.ne.s32.totalorder %s27_s20, %s3421_s21  ;;  %p3427_p2 = scmp.lt.s32.totalorder %s3421_s21, %s3421_s21 }
   0x5   :  { %p3428_p3 = por %p3427_p2, %p3426_p1 }
   0x7   :  { %p3429_p4 = pnand %p3428_p3, %p3422_p0 }
   0x9   :  { %3432 = shalt.err (!%p3429_p4)
}
   0xa   :  { %s3459_s22 = smov [#allocation2]  }
   0xb   :  { %29 = dma.vmem_to_smem %s27_s20, 128, %s3459_s22, [#allocation4]  }
   0xc   :  { %3455 = dma.done.wait [#allocation4], 128  }
   0xd   :  { %3456 = vsyncadd [#allocation4], 4294967168 }
   0xe   :  { %33 = sfence }
   0xf   :  { %v2584_v0 = vld [vmem:[%s4171_s1 + $0x290] sm:$0xff]  ;;  %v2585_v1 = vld [vmem:[%s4171_s1 + $0x298] sm:$0xff]  ;;  %v2582_v2 = vld [vmem:[%s4171_s1 + $0x280] sm:$0xff]  ;;  %v3460_v3 = vmov 0   ;;  %v3461_v9 = vmov 1   ;;  %v3462_v27 = vmov 2   ;;  %v107_v28 = vlaneseq }
  0x10   :  { %3278 = vset.pattern.permute.xlu1 %v3460_v3  ;;  %3276 = vset.pattern.permute.xlu0 %v3460_v3  ;;  %v56_v4 = vpack.c.bf16 %v2585_v1, %v2584_v0  ;;  %v2583_v5 = vld [vmem:[%s4171_s1 + $0x288] sm:$0xff]  ;;  %v2586_v7 = vld [vmem:[%s4171_s1 + $0x2a0] sm:$0xff]  ;;  %v2588_v10 = vld [vmem:[%s4171_s1 + $0x2b0] sm:$0xff]  ;;  %vm3464_vm0 = vmmov 0   ;;  %s2623_s30 = sld [smem:[#allocation2 + $0x280]]  ;;  %s2624_s6 = sld [smem:[#allocation2 + $0x281]] }
  0x11   :  { %v55_v6 = vpack.c.bf16 %v2583_v5, %v2582_v2  ;;  %v2587_v8 = vld [vmem:[%s4171_s1 + $0x2a8] sm:$0xff]  ;;  %v2589_v11 = vld [vmem:[%s4171_s1 + $0x2b8] sm:$0xff]  ;;  %v2590_v13 = vld [vmem:[%s4171_s1 + $0x2c0] sm:$0xff]  ;;  %v108_v30 = vshrl.u32 %v107_v28, 7  ;;  %s2709_s28 = sld [smem:[#allocation2 + $0x180]]  ;;  %s2710_s29 = sld [smem:[#allocation2 + $0x181]] }
  0x12   :  { %71 = vperm.xlu1 %3278, %v56_v4   ;;  %v57_v12 = vpack.c.bf16 %v2587_v8, %v2586_v7  ;;  %v2591_v14 = vld [vmem:[%s4171_s1 + $0x2c8] sm:$0xff]  ;;  %v58_v15 = vpack.c.bf16 %v2589_v11, %v2588_v10  ;;  %v2592_v16 = vld [vmem:[%s4171_s1 + $0x2d0] sm:$0xff]  ;;  %v2593_v17 = vld [vmem:[%s4171_s1 + $0x2d8] sm:$0xff]  ;;  %s2752_s4 = sld [smem:[#allocation2 + $0x100]]  ;;  %s2753_s27 = sld [smem:[#allocation2 + $0x101]] }
  0x13   :  { %66 = vperm.xlu0 %3276, %v55_v6   ;;  %v59_v18 = vpack.c.bf16 %v2591_v14, %v2590_v13  ;;  %v2594_v19 = vld [vmem:[%s4171_s1 + $0x2e0] sm:$0xff]  ;;  %v2595_v20 = vld [vmem:[%s4171_s1 + $0x2e8] sm:$0xff]  ;;  %v60_v21 = vpack.c.bf16 %v2593_v17, %v2592_v16  ;;  %v2596_v22 = vld [vmem:[%s4171_s1 + $0x2f0] sm:$0xff]  ;;  %v3566_v32 = vsub.s32 0, %v108_v30  ;;  %v3463_v30 = vmov 0.0   ;;  %s2795_s24 = sld [smem:[#allocation2 + $0x80]] }
  0x14   :  { %v2597_v23 = vld [vmem:[%s4171_s1 + $0x2f8] sm:$0xff]  ;;  %v61_v24 = vpack.c.bf16 %v2595_v20, %v2594_v19  ;;  %v3349_v26 = vld [vmem:[%s4172_s2 + $0x140] sm:$0xff]   ;;  %2989 = vmatprep.subr.bf16.mxu1 %v3463_v30  ;;  %3005 = vmatprep.mubr.msk.bf16.mxu1 %vm3464_vm0, %v3463_v30  ;;  %s2796_s25 = sld [smem:[#allocation2 + $0x81]]  ;;  %s2544_s14 = sld [smem:[#allocation2]] }
  0x15   :  { %v62_v25 = vpack.c.bf16 %v2597_v23, %v2596_v22  ;;  %2973 = vmatprep.mubr.bf16.mxu0 %v3349_v26  ;;  %v3562_v29 = vld [vmem:[%s4170_s0] sm:$0x1]  ;;  %v3351_v22 = vld [vmem:[%s4172_s2 + $0x150] sm:$0xff]   ;;  %v3352_v23 = vld [vmem:[%s4172_s2 + $0x158] sm:$0xff]   ;;  %s2805_s15 = sld [smem:[#allocation2 + $0x1]] }
  0x16   :  { %3279 = vset.pattern.permute.xlu1 %v3461_v9  ;;  %v63_v31 = vpack.c.bf16 %v3562_v29, %v3562_v29  ;;  %v3355_v26 = vld [vmem:[%s4172_s2 + $0x170] sm:$0xff]   ;;  %v3356_v28 = vld [vmem:[%s4172_s2 + $0x178] sm:$0xff]  }
  0x17   :  { %3277 = vset.pattern.permute.xlu0 %v3461_v9  ;;  %124 = vperm.xlu1 %3279, %v56_v4  }
  0x18   :  { %120 = vperm.xlu0 %3277, %v55_v6   ;;  %v105_v33 = vpack.i.b16 %v63_v31, %v63_v31  ;;  %v2625_v31 = vld [vmem:[%s4171_s1 + $0x200] sm:$0xff] }
  0x1a   :  { %v110_v34 = vrot.slane %v105_v33, %v3566_v32  ;;  %v2626_v33 = vld [vmem:[%s4171_s1 + $0x208] sm:$0xff] }
  0x1b   :  { %3280 = vset.pattern.permute.xlu1 %v3460_v3 }
  0x1c   :  { %128 = vperm.xlu0 %3277, %v57_v12   ;;  %76 = vperm.xlu1 %3280, %v57_v12  }
  0x20   :  { %132 = vperm.xlu0 %3277, %v58_v15   ;;  %81 = vperm.xlu1 %3280, %v58_v15  }
  0x24   :  { %136 = vperm.xlu0 %3277, %v59_v18   ;;  %86 = vperm.xlu1 %3280, %v59_v18  }
  0x28   :  { %140 = vperm.xlu0 %3277, %v60_v21   ;;  %91 = vperm.xlu1 %3280, %v60_v21  }
  0x2c   :  { %144 = vperm.xlu0 %3277, %v61_v24   ;;  %96 = vperm.xlu1 %3280, %v61_v24  }
  0x30   :  { %148 = vperm.xlu0 %3277, %v62_v25   ;;  %101 = vperm.xlu1 %3280, %v62_v25  }
  0x34   :  { %3281 = vset.pattern.permute.xlu1 %v3462_v27  ;;  %3282 = vset.pattern.permute.xlu0 %v3462_v27 }
  0x35   :  { %346 = vperm.xlu1 %3281, %v55_v6   ;;  %350 = vperm.xlu0 %3282, %v56_v4  }
  0x39   :  { %354 = vperm.xlu1 %3281, %v57_v12   ;;  %362 = vperm.xlu0 %3282, %v59_v18  }
  0x3d   :  { %358 = vperm.xlu1 %3281, %v58_v15   ;;  %370 = vperm.xlu0 %3282, %v61_v24   ;;  %v3353_v24 = vld [vmem:[%s4172_s2 + $0x160] sm:$0xff]  }
  0x41   :  { %366 = vperm.xlu1 %3281, %v60_v21   ;;  %3283 = vset.pattern.permute.xlu0 %v3460_v3  ;;  %v3350_v21 = vld [vmem:[%s4172_s2 + $0x148] sm:$0xff]  }
  0x45   :  { %374 = vperm.xlu1 %3281, %v62_v25   ;;  %v3354_v25 = vld [vmem:[%s4172_s2 + $0x168] sm:$0xff]  }
  0x49   :  { %3284 = vset.pattern.permute.xlu1 %v3461_v9 }
  0x91   :  { %v72_v35 = vpop.permute.xlu1 %71 }
  0x92   :  { %v67_v36 = vpop.permute.xlu0 %66  ;;  %v112_v37 = vmul.bf16 %v110_v34, %v72_v35  ;;  %v2627_v35 = vld [vmem:[%s4171_s1 + $0x210] sm:$0xff] }
  0x93   :  { %v111_v38 = vmul.bf16 %v110_v34, %v67_v36  ;;  %v2628_v36 = vld [vmem:[%s4171_s1 + $0x218] sm:$0xff] }
  0x96   :  { %v125_v39 = vpop.permute.xlu1 %124 }
  0x97   :  { %v152_v40 = vadd.bf16 %v125_v39, %v112_v37  ;;  %v121_v41 = vpop.permute.xlu0 %120  ;;  %v476_v37 = vpack.c.bf16 %v2628_v36, %v2627_v35  ;;  %v2630_v39 = vld [vmem:[%s4171_s1 + $0x228] sm:$0xff] }
  0x98   :  { %v151_v42 = vadd.bf16 %v121_v41, %v111_v38  ;;  %v2629_v38 = vld [vmem:[%s4171_s1 + $0x220] sm:$0xff]  ;;  %v2631_v41 = vld [vmem:[%s4171_s1 + $0x230] sm:$0xff] }
  0x99   :  { %v160_v43 = vmul.bf16 1009007652, %v152_v40 }
  0x9a   :  { %v159_v44 = vmul.bf16 1009007652, %v151_v42 }
  0x9b   :  { %v129_v45 = vpop.permute.xlu0 %128  ;;  %v77_v46 = vpop.permute.xlu1 %76  ;;  %v168_v49 = vmax.bf16 %v160_v43, %v152_v40  ;;  %v477_v40 = vpack.c.bf16 %v2630_v39, %v2629_v38 }
  0x9c   :  { %v113_v47 = vmul.bf16 %v110_v34, %v77_v46  ;;  %v167_v48 = vmax.bf16 %v159_v44, %v151_v42  ;;  %v2632_v42 = vld [vmem:[%s4171_s1 + $0x238] sm:$0xff]  ;;  %v2633_v44 = vld [vmem:[%s4171_s1 + $0x240] sm:$0xff] }
  0x9d   :  { %v478_v43 = vpack.c.bf16 %v2632_v42, %v2631_v41 }
  0x9e   :  { %v153_v50 = vadd.bf16 %v129_v45, %v113_v47  ;;  %2957 = vmatprep.subr.bf16.mxu0 %v167_v48  ;;  %v2634_v45 = vld [vmem:[%s4171_s1 + $0x248] sm:$0xff]  ;;  %v2637_v47 = vld [vmem:[%s4171_s1 + $0x260] sm:$0xff] }
  0x9f   :  { %v133_v51 = vpop.permute.xlu0 %132  ;;  %2958 = vmatpush3.bf16.msra.mxu0 %v167_v48  ;;  %v82_v52 = vpop.permute.xlu1 %81  ;;  %v479_v46 = vpack.c.bf16 %v2634_v45, %v2633_v44  ;;  %v2638_v48 = vld [vmem:[%s4171_s1 + $0x268] sm:$0xff] }
  0xa0   :  { %v161_v53 = vmul.bf16 1009007652, %v153_v50  ;;  %v114_v54 = vmul.bf16 %v110_v34, %v82_v52  ;;  %2959 = vmatprep.subr.bf16.mxu0 %v168_v49  ;;  %v2639_v52 = vld [vmem:[%s4171_s1 + $0x270] sm:$0xff] }
  0xa2   :  { %v154_v55 = vadd.bf16 %v133_v51, %v114_v54  ;;  %v169_v56 = vmax.bf16 %v161_v53, %v153_v50  ;;  %v2635_v50 = vld [vmem:[%s4171_s1 + $0x250] sm:$0xff]  ;;  %v2636_v51 = vld [vmem:[%s4171_s1 + $0x258] sm:$0xff] }
  0xa3   :  { %v137_v57 = vpop.permute.xlu0 %136  ;;  %2960 = vmatpush3.bf16.msra.mxu0 %v168_v49  ;;  %v87_v58 = vpop.permute.xlu1 %86  ;;  %v481_v49 = vpack.c.bf16 %v2638_v48, %v2637_v47  ;;  %v2640_v53 = vld [vmem:[%s4171_s1 + $0x278] sm:$0xff]  ;;  %v480_v54 = vpack.c.bf16 %v2636_v51, %v2635_v50 }
  0xa4   :  { %v162_v59 = vmul.bf16 1009007652, %v154_v55  ;;  %v115_v60 = vmul.bf16 %v110_v34, %v87_v58  ;;  %2961 = vmatprep.subr.bf16.mxu0 %v169_v56 }
  0xa6   :  { %v155_v61 = vadd.bf16 %v137_v57, %v115_v60  ;;  %v170_v62 = vmax.bf16 %v162_v59, %v154_v55  ;;  %v482_v55 = vpack.c.bf16 %v2640_v53, %v2639_v52 }
  0xa7   :  { %v141_v63 = vpop.permute.xlu0 %140  ;;  %2962 = vmatpush3.bf16.msra.mxu0 %v169_v56  ;;  %v92_v0 = vpop.permute.xlu1 %91 }
  0xa8   :  { %v163_v1 = vmul.bf16 1009007652, %v155_v61  ;;  %v116_v2 = vmul.bf16 %v110_v34, %v92_v0  ;;  %2963 = vmatprep.subr.bf16.mxu0 %v170_v62 }
  0xaa   :  { %v156_v4 = vadd.bf16 %v141_v63, %v116_v2  ;;  %v171_v5 = vmax.bf16 %v163_v1, %v155_v61 }
  0xab   :  { %v145_v6 = vpop.permute.xlu0 %144  ;;  %2964 = vmatpush3.bf16.msra.mxu0 %v170_v62  ;;  %v97_v7 = vpop.permute.xlu1 %96 }
  0xac   :  { %v164_v8 = vmul.bf16 1009007652, %v156_v4  ;;  %v117_v10 = vmul.bf16 %v110_v34, %v97_v7  ;;  %2965 = vmatprep.subr.bf16.mxu0 %v171_v5 }
  0xae   :  { %v157_v11 = vadd.bf16 %v145_v6, %v117_v10  ;;  %v172_v12 = vmax.bf16 %v164_v8, %v156_v4 }
  0xaf   :  { %2966 = vmatpush3.bf16.msra.mxu0 %v171_v5  ;;  %v102_v13 = vpop.permute.xlu1 %101  ;;  %v149_v16 = vpop.permute.xlu0 %148 }
  0xb0   :  { %v165_v14 = vmul.bf16 1009007652, %v157_v11  ;;  %v118_v15 = vmul.bf16 %v110_v34, %v102_v13  ;;  %2967 = vmatprep.subr.bf16.mxu0 %v172_v12  ;;  %v475_v34 = vpack.c.bf16 %v2626_v33, %v2625_v31 }
  0xb2   :  { %v158_v17 = vadd.bf16 %v149_v16, %v118_v15  ;;  %v173_v18 = vmax.bf16 %v165_v14, %v157_v11  ;;  %540 = vperm.xlu1 %3284, %v475_v34   ;;  %486 = vperm.xlu0 %3283, %v475_v34  }
  0xb3   :  { %2968 = vmatpush3.bf16.msra.mxu0 %v172_v12 }
  0xb4   :  { %v166_v19 = vmul.bf16 1009007652, %v158_v17  ;;  %2969 = vmatprep.subr.bf16.mxu0 %v173_v18  ;;  %v347_v57 = vpop.permute.xlu1 %346  ;;  %v351_v63 = vpop.permute.xlu0 %350 }
  0xb6   :  { %v174_v20 = vmax.bf16 %v166_v19, %v158_v17  ;;  %3285 = vset.pattern.permute.xlu1 %v3460_v3  ;;  %3286 = vset.pattern.permute.xlu0 %v3461_v9 }
  0xb7   :  { %2970 = vmatpush3.bf16.msra.mxu0 %v173_v18  ;;  %491 = vperm.xlu1 %3285, %v476_v37  }
  0xb8   :  { %2971 = vmatprep.subr.bf16.mxu0 %v174_v20  ;;  %544 = vperm.xlu0 %3286, %v476_v37   ;;  %v355_v2 = vpop.permute.xlu1 %354  ;;  %v363_v31 = vpop.permute.xlu0 %362 }
  0xbb   :  { %2972 = vmatpush3.bf16.msra.mxu0 %v174_v20  ;;  %496 = vperm.xlu1 %3285, %v477_v40  }
  0xbc   :  { %3288 = vset.pattern.permute.xlu0 %v3460_v3  ;;  %v359_v14 = vpop.permute.xlu1 %358 }
  0xbd   :  { %501 = vperm.xlu0 %3288, %v478_v43  }
  0xbe   :  { %2974 = vmatmul.mubr.bf16.vlgmr.msra.gmra.mrb[0].mxu0 %v3350_v21 }
  0xbf   :  { %2977 = vmatprep.mubr.bf16.mxu0 %v3351_v22  ;;  %3287 = vset.pattern.permute.xlu1 %v3461_v9 }
  0xc0   :  { %548 = vperm.xlu1 %3287, %v477_v40  }
  0xc1   :  { %3290 = vset.pattern.permute.xlu0 %v3461_v9 }
  0xc2   :  { %556 = vperm.xlu0 %3290, %v479_v46  }
  0xc4   :  { %552 = vperm.xlu1 %3287, %v478_v43  }
  0xc6   :  { %2978 = vmatmul.mubr.bf16.gmra.mrb[4].mxu0 %v3352_v23  ;;  %3292 = vset.pattern.permute.xlu0 %v3460_v3 }
  0xc7   :  { %2981 = vmatprep.mubr.bf16.mxu0 %v3353_v24  ;;  %516 = vperm.xlu0 %3292, %v481_v49  }
  0xc8   :  { %3289 = vset.pattern.permute.xlu1 %v3460_v3 }
  0xc9   :  { %506 = vperm.xlu1 %3289, %v479_v46  }
  0xcb   :  { %3294 = vset.pattern.permute.xlu0 %v3461_v9 }
  0xcc   :  { %568 = vperm.xlu0 %3294, %v482_v55  }
  0xcd   :  { %511 = vperm.xlu1 %3289, %v480_v54  }
  0xce   :  { %2982 = vmatmul.mubr.bf16.gmra.mrb[8].mxu0 %v3354_v25 }
  0xcf   :  { %2985 = vmatprep.mubr.bf16.mxu0 %v3355_v26 }
  0xd0   :  { %3296 = vset.pattern.permute.xlu0 %v3462_v27 }
  0xd1   :  { %774 = vperm.xlu0 %3296, %v477_v40   ;;  %3291 = vset.pattern.permute.xlu1 %v3461_v9 }
  0xd2   :  { %560 = vperm.xlu1 %3291, %v480_v54  }
  0xd5   :  { %786 = vperm.xlu0 %3296, %v480_v54   ;;  %v2622_v54 = vld [vmem:[%s4173_s3 + $0x14] sm:$0xf] }
  0xd6   :  { %2986 = vmatmul.mubr.bf16.gmra.mrb[12].mxu0 %v3356_v28  ;;  %564 = vperm.xlu1 %3291, %v481_v49   ;;  %v367_v28 = vpop.permute.xlu1 %366 }
  0xd9   :  { %794 = vperm.xlu0 %3296, %v482_v55  }
  0xda   :  { %3293 = vset.pattern.permute.xlu1 %v3460_v3  ;;  %v375_v45 = vpop.permute.xlu1 %374 }
  0xdb   :  { %521 = vperm.xlu1 %3293, %v482_v55   ;;  %v3357_v55 = vld [vmem:[%s4172_s2 + $0x100] sm:$0xff]  }
  0xdc   :  { %3025 = vmatprep.mubr.bf16.mxu0 %v3357_v55 }
  0xdd   :  { %3298 = vset.pattern.permute.xlu0 %v3461_v9 }
  0xdf   :  { %3295 = vset.pattern.permute.xlu1 %v3462_v27 }
  0xe0   :  { %766 = vperm.xlu1 %3295, %v475_v34  }
  0xe4   :  { %770 = vperm.xlu1 %3295, %v476_v37  }
  0xe8   :  { %778 = vperm.xlu1 %3295, %v478_v43  }
  0xec   :  { %782 = vperm.xlu1 %3295, %v479_v46   ;;  %v371_v46 = vpop.permute.xlu0 %370 }
  0xf0   :  { %790 = vperm.xlu1 %3295, %v481_v49  }
  0xf4   :  { %3297 = vset.pattern.permute.xlu1 %v3460_v3 }
 0x191   :  { %v2975_v56 = vpop.f32.mrb[0].mxu0 }
 0x192   :  { %v274_v58 = vpop.f32.mrb[1].mxu0 }
 0x193   :  { %v2976_v59 = vpop.f32.mrb[2].mxu0 }
 0x194   :  { %v338_v60 = vpack.c.bf16 %v2976_v59, %v2975_v56  ;;  %v277_v61 = vpop.f32.mrb[3].mxu0  ;;  %v444_v56 = vstv %s2623_s30  ;;  %s2666_s30 = sld [smem:[#allocation2 + $0x200]] }
 0x195   :  { %v337_v62 = vpack.c.bf16 %v277_v61, %v274_v58  ;;  %v541_v58 = vpop.permute.xlu1 %540 }
 0x196   :  { %v378_v0 = vadd.bf16 %v351_v63, %v338_v60 }
 0x197   :  { %v377_v1 = vadd.bf16 %v347_v57, %v337_v62 }
 0x198   :  { %v386_v7 = vmul.bf16 1009007652, %v378_v0 }
 0x199   :  { %v2979_v4 = vpop.f32.mrb[4].mxu0  ;;  %v385_v5 = vmul.bf16 1009007652, %v377_v1  ;;  %v492_v63 = vpop.permute.xlu1 %491 }
 0x19a   :  { %v290_v6 = vpop.f32.mrb[5].mxu0  ;;  %v394_v17 = vmax.bf16 %v386_v7, %v378_v0 }
 0x19b   :  { %v2980_v8 = vpop.f32.mrb[6].mxu0  ;;  %v393_v10 = vmax.bf16 %v385_v5, %v377_v1 }
 0x19c   :  { %v340_v11 = vpack.c.bf16 %v2980_v8, %v2979_v4  ;;  %v293_v12 = vpop.f32.mrb[7].mxu0  ;;  %v448_v4 = vstv %s2624_s6  ;;  %s2667_s6 = sld [smem:[#allocation2 + $0x201]] }
 0x19d   :  { %v339_v13 = vpack.c.bf16 %v293_v12, %v290_v6  ;;  %2990 = vmatpush3.bf16.msra.mxu1 %v393_v10  ;;  %v497_v1 = vpop.permute.xlu1 %496  ;;  %v37_v10 = vld [vmem:[%s4170_s0 + $0x1] sm:$0x1] }
 0x19e   :  { %2991 = vmatprep.subr.bf16.mxu1 %v3463_v30  ;;  %v380_v15 = vadd.bf16 %v359_v14, %v340_v11 }
 0x19f   :  { %v379_v16 = vadd.bf16 %v355_v2, %v339_v13 }
 0x1a0   :  { %v388_v21 = vmul.bf16 1009007652, %v380_v15 }
 0x1a1   :  { %v387_v18 = vmul.bf16 1009007652, %v379_v16  ;;  %v2983_v19 = vpop.f32.mrb[8].mxu0  ;;  %2992 = vmatpush3.bf16.msra.mxu1 %v394_v17  ;;  %v549_v7 = vpop.permute.xlu1 %548 }
 0x1a2   :  { %v306_v20 = vpop.f32.mrb[9].mxu0  ;;  %2993 = vmatprep.subr.bf16.mxu1 %v3463_v30  ;;  %v396_v35 = vmax.bf16 %v388_v21, %v380_v15  ;;  %v487_v15 = vpop.permute.xlu0 %486 }
 0x1a3   :  { %v2984_v22 = vpop.f32.mrb[10].mxu0  ;;  %v395_v23 = vmax.bf16 %v387_v18, %v379_v16 }
 0x1a4   :  { %v342_v24 = vpack.c.bf16 %v2984_v22, %v2983_v19  ;;  %v309_v25 = vpop.f32.mrb[11].mxu0 }
 0x1a5   :  { %v341_v26 = vpack.c.bf16 %v309_v25, %v306_v20  ;;  %2994 = vmatpush3.bf16.msra.mxu1 %v395_v23  ;;  %v553_v11 = vpop.permute.xlu1 %552 }
 0x1a6   :  { %2995 = vmatprep.subr.bf16.mxu1 %v3463_v30  ;;  %v382_v33 = vadd.bf16 %v367_v28, %v342_v24  ;;  %v545_v20 = vpop.permute.xlu0 %544 }
 0x1a7   :  { %v381_v34 = vadd.bf16 %v363_v31, %v341_v26 }
 0x1a8   :  { %v390_v39 = vmul.bf16 1009007652, %v382_v33 }
 0x1a9   :  { %v389_v36 = vmul.bf16 1009007652, %v381_v34  ;;  %v2987_v37 = vpop.f32.mrb[12].mxu0  ;;  %2996 = vmatpush3.bf16.msra.mxu1 %v396_v35  ;;  %v507_v17 = vpop.permute.xlu1 %506 }
 0x1aa   :  { %v322_v38 = vpop.f32.mrb[13].mxu0  ;;  %2997 = vmatprep.subr.bf16.mxu1 %v3463_v30  ;;  %v398_v49 = vmax.bf16 %v390_v39, %v382_v33  ;;  %v502_v31 = vpop.permute.xlu0 %501 }
 0x1ab   :  { %v2988_v40 = vpop.f32.mrb[14].mxu0  ;;  %v397_v41 = vmax.bf16 %v389_v36, %v381_v34 }
 0x1ac   :  { %v344_v42 = vpack.c.bf16 %v2988_v40, %v2987_v37  ;;  %v325_v43 = vpop.f32.mrb[15].mxu0 }
 0x1ad   :  { %v343_v44 = vpack.c.bf16 %v325_v43, %v322_v38  ;;  %2998 = vmatpush3.bf16.msra.mxu1 %v397_v41  ;;  %v512_v23 = vpop.permute.xlu1 %511 }
 0x1ae   :  { %2999 = vmatprep.subr.bf16.mxu1 %v3463_v30  ;;  %v384_v47 = vadd.bf16 %v375_v45, %v344_v42  ;;  %v557_v42 = vpop.permute.xlu0 %556 }
 0x1af   :  { %v383_v48 = vadd.bf16 %v371_v46, %v343_v44 }
 0x1b0   :  { %v392_v51 = vmul.bf16 1009007652, %v384_v47 }
 0x1b1   :  { %v391_v50 = vmul.bf16 1009007652, %v383_v48  ;;  %3000 = vmatpush3.bf16.msra.mxu1 %v398_v49  ;;  %v561_v36 = vpop.permute.xlu1 %560 }
 0x1b2   :  { %3001 = vmatprep.subr.bf16.mxu1 %v3463_v30  ;;  %v400_v53 = vmax.bf16 %v392_v51, %v384_v47 }
 0x1b3   :  { %v399_v52 = vmax.bf16 %v391_v50, %v383_v48  ;;  %v517_v48 = vpop.permute.xlu0 %516 }
 0x1b5   :  { %3002 = vmatpush3.bf16.msra.mxu1 %v399_v52  ;;  %v565_v43 = vpop.permute.xlu1 %564 }
 0x1b6   :  { %3003 = vmatprep.subr.bf16.mxu1 %v3463_v30 }
 0x1b9   :  { %3004 = vmatpush3.bf16.msra.mxu1 %v400_v53  ;;  %v522_v53 = vpop.permute.xlu1 %521 }
 0x1ba   :  { %3041 = vmatprep.subr.bf16.mxu1 %v3463_v30 }
 0x1bc   :  { %3006 = vmatmul.mubr.bf16.vlgmr.msra.gmra.mrb[0].mxu1 %v2622_v54 }
 0x1bd   :  { %3057 = vmatprep.mubr.msk.bf16.mxu1 %vm3464_vm0, %v3463_v30 }
 0x28f   :  { %v437_v57 = vpop.f32.mrb[0].mxu1 }
 0x290   :  { %v445_v59 = vadd.f32 %v444_v56, %v437_v57  ;;  %v3007_v60 = vpop.f32.mrb[1].mxu1  ;;  %v449_v6 = vadd.f32 %v448_v4, %v437_v57  ;;  %v3358_v4 = vld [vmem:[%s4172_s2 + $0x108] sm:$0xff]  }
 0x291   :  { %v440_v61 = vpop.f32.mrb[2].mxu1 }
 0x292   :  { %3397 = vtanh.f32 %v445_v59  ;;  %v3008_v62 = vpop.f32.mrb[3].mxu1  ;;  %v451_v8 = vrot.slane %v449_v6, 1  ;;  %v3360_v6 = vld [vmem:[%s4172_s2 + $0x118] sm:$0xff]  }
 0x294   :  { %v453_v12 = vsub.f32 %v37_v10, %v451_v8  ;;  %v3362_v8 = vld [vmem:[%s4172_s2 + $0x128] sm:$0xff]   ;;  %v3363_v10 = vld [vmem:[%s4172_s2 + $0x130] sm:$0xff]  }
 0x29c   :  { %v3671_v0 = vpop.eup %3397 }
 0x29d   :  { %v454_v2 = vsub.f32 0.0, %v3671_v0 }
 0x29f   :  { %v455_v5 = vmul.f32 1.442695, %v454_v2 }
 0x2a1   :  { %3399 = vpow2.f32 %v455_v5  ;;  %v3359_v5 = vld [vmem:[%s4172_s2 + $0x110] sm:$0xff]  }
 0x2ab   :  { %v3400_v13 = vpop.eup %3399 }
 0x2ac   :  { %v3679_v14 = vmul.f32 %v3400_v13, %v453_v12  ;;  %v2668_v12 = vld [vmem:[%s4171_s1 + $0x180] sm:$0xff]  ;;  %v2669_v13 = vld [vmem:[%s4171_s1 + $0x188] sm:$0xff] }
 0x2ae   :  { %v483_v16 = vpack.c.bf16 %v3679_v14, %v3679_v14 }
 0x2b0   :  { %v525_v18 = vpack.i.b16 %v483_v16, %v483_v16  ;;  %v896_v16 = vpack.c.bf16 %v2669_v13, %v2668_v12 }
 0x2b2   :  { %v530_v19 = vrot.slane %v525_v18, %v3566_v32  ;;  %907 = vperm.xlu1 %3297, %v896_v16   ;;  %961 = vperm.xlu0 %3298, %v896_v16  }
 0x2b4   :  { %v532_v21 = vmul.bf16 %v530_v19, %v492_v63  ;;  %v531_v22 = vmul.bf16 %v530_v19, %v487_v15  ;;  %v533_v24 = vmul.bf16 %v530_v19, %v497_v1  ;;  %v534_v35 = vmul.bf16 %v530_v19, %v502_v31  ;;  %v2670_v15 = vld [vmem:[%s4171_s1 + $0x190] sm:$0xff]  ;;  %v2676_v31 = vld [vmem:[%s4171_s1 + $0x1c0] sm:$0xff] }
 0x2b5   :  { %v535_v39 = vmul.bf16 %v530_v19, %v507_v17  ;;  %v536_v45 = vmul.bf16 %v530_v19, %v512_v23  ;;  %v537_v51 = vmul.bf16 %v530_v19, %v517_v48  ;;  %v538_v57 = vmul.bf16 %v530_v19, %v522_v53  ;;  %v2671_v17 = vld [vmem:[%s4171_s1 + $0x198] sm:$0xff]  ;;  %v2672_v19 = vld [vmem:[%s4171_s1 + $0x1a0] sm:$0xff] }
 0x2b6   :  { %v571_v25 = vadd.bf16 %v541_v58, %v531_v22  ;;  %v572_v26 = vadd.bf16 %v545_v20, %v532_v21  ;;  %v573_v33 = vadd.bf16 %v549_v7, %v533_v24  ;;  %v574_v41 = vadd.bf16 %v553_v11, %v534_v35  ;;  %v569_v58 = vpop.permute.xlu0 %568  ;;  %v3361_v7 = vld [vmem:[%s4172_s2 + $0x120] sm:$0xff]   ;;  %v3364_v11 = vld [vmem:[%s4172_s2 + $0x138] sm:$0xff]   ;;  %v2673_v20 = vld [vmem:[%s4171_s1 + $0x1a8] sm:$0xff]  ;;  %3300 = vset.pattern.permute.xlu0 %v3460_v3 }
 0x2b7   :  { %v575_v47 = vadd.bf16 %v557_v42, %v535_v39  ;;  %v576_v49 = vadd.bf16 %v561_v36, %v536_v45  ;;  %v577_v56 = vadd.bf16 %v565_v43, %v537_v51  ;;  %v578_v61 = vadd.bf16 %v569_v58, %v538_v57  ;;  %v2674_v22 = vld [vmem:[%s4171_s1 + $0x1b0] sm:$0xff]  ;;  %v2675_v23 = vld [vmem:[%s4171_s1 + $0x1b8] sm:$0xff]  ;;  %v2681_v35 = vld [vmem:[%s4171_s1 + $0x1e8] sm:$0xff] }
 0x2b8   :  { %v579_v28 = vmul.bf16 1009007652, %v571_v25  ;;  %v580_v34 = vmul.bf16 1009007652, %v572_v26  ;;  %v581_v38 = vmul.bf16 1009007652, %v573_v33  ;;  %v897_v18 = vpack.c.bf16 %v2671_v17, %v2670_v15 }
 0x2b9   :  { %v582_v46 = vmul.bf16 1009007652, %v574_v41  ;;  %v583_v50 = vmul.bf16 1009007652, %v575_v47  ;;  %v584_v54 = vmul.bf16 1009007652, %v576_v49  ;;  %v898_v21 = vpack.c.bf16 %v2673_v20, %v2672_v19 }
 0x2ba   :  { %v587_v37 = vmax.bf16 %v579_v28, %v571_v25  ;;  %v588_v40 = vmax.bf16 %v580_v34, %v572_v26  ;;  %v589_v44 = vmax.bf16 %v581_v38, %v573_v33  ;;  %v585_v60 = vmul.bf16 1009007652, %v577_v56  ;;  %912 = vperm.xlu1 %3297, %v897_v18   ;;  %v2678_v25 = vld [vmem:[%s4171_s1 + $0x1d0] sm:$0xff]  ;;  %v2679_v26 = vld [vmem:[%s4171_s1 + $0x1d8] sm:$0xff]  ;;  %v2677_v33 = vld [vmem:[%s4171_s1 + $0x1c8] sm:$0xff] }
 0x2bb   :  { %v590_v52 = vmax.bf16 %v582_v46, %v574_v41  ;;  %v591_v55 = vmax.bf16 %v583_v50, %v575_v47  ;;  %v592_v59 = vmax.bf16 %v584_v54, %v576_v49  ;;  %v586_v62 = vmul.bf16 1009007652, %v578_v61  ;;  %917 = vperm.xlu0 %3300, %v898_v21   ;;  %v2680_v34 = vld [vmem:[%s4171_s1 + $0x1e0] sm:$0xff]  ;;  %v2682_v38 = vld [vmem:[%s4171_s1 + $0x1f0] sm:$0xff]  ;;  %v2683_v39 = vld [vmem:[%s4171_s1 + $0x1f8] sm:$0xff]  ;;  %v767_v41 = vpop.permute.xlu1 %766 }
 0x2bc   :  { %3009 = vmatprep.subr.bf16.mxu0 %v587_v37  ;;  %v593_v63 = vmax.bf16 %v585_v60, %v577_v56  ;;  %v899_v24 = vpack.c.bf16 %v2675_v23, %v2674_v22  ;;  %v901_v28 = vpack.c.bf16 %v2679_v26, %v2678_v25  ;;  %v900_v36 = vpack.c.bf16 %v2677_v33, %v2676_v31 }
 0x2bd   :  { %3010 = vmatpush3.bf16.msra.mxu0 %v587_v37  ;;  %v594_v1 = vmax.bf16 %v586_v62, %v578_v61  ;;  %v902_v37 = vpack.c.bf16 %v2681_v35, %v2680_v34  ;;  %v775_v61 = vpop.permute.xlu0 %774 }
 0x2be   :  { %3011 = vmatprep.subr.bf16.mxu0 %v588_v40  ;;  %3299 = vset.pattern.permute.xlu1 %v3461_v9 }
 0x2bf   :  { %965 = vperm.xlu1 %3299, %v897_v18   ;;  %3302 = vset.pattern.permute.xlu0 %v3461_v9  ;;  %v771_v48 = vpop.permute.xlu1 %770 }
 0x2c0   :  { %973 = vperm.xlu0 %3302, %v899_v24  }
 0x2c1   :  { %3012 = vmatpush3.bf16.msra.mxu0 %v588_v40  ;;  %v903_v40 = vpack.c.bf16 %v2683_v39, %v2682_v38 }
 0x2c2   :  { %3013 = vmatprep.subr.bf16.mxu0 %v589_v44 }
 0x2c3   :  { %969 = vperm.xlu1 %3299, %v898_v21   ;;  %v779_v60 = vpop.permute.xlu1 %778 }
 0x2c4   :  { %3304 = vset.pattern.permute.xlu0 %v3460_v3 }
 0x2c5   :  { %3014 = vmatpush3.bf16.msra.mxu0 %v589_v44  ;;  %932 = vperm.xlu0 %3304, %v901_v28  }
 0x2c6   :  { %3015 = vmatprep.subr.bf16.mxu0 %v590_v52 }
 0x2c7   :  { %3301 = vset.pattern.permute.xlu1 %v3460_v3  ;;  %v783_v15 = vpop.permute.xlu1 %782 }
 0x2c8   :  { %922 = vperm.xlu1 %3301, %v899_v24  }
 0x2c9   :  { %3016 = vmatpush3.bf16.msra.mxu0 %v590_v52  ;;  %3306 = vset.pattern.permute.xlu0 %v3461_v9 }
 0x2ca   :  { %3017 = vmatprep.subr.bf16.mxu0 %v591_v55  ;;  %985 = vperm.xlu0 %3306, %v902_v37  }
 0x2cb   :  { %v791_v33 = vpop.permute.xlu1 %790 }
 0x2cc   :  { %927 = vperm.xlu1 %3301, %v900_v36  }
 0x2cd   :  { %3018 = vmatpush3.bf16.msra.mxu0 %v591_v55 }
 0x2ce   :  { %3019 = vmatprep.subr.bf16.mxu0 %v592_v59  ;;  %3308 = vset.pattern.permute.xlu0 %v3462_v27 }
 0x2cf   :  { %1187 = vperm.xlu0 %3308, %v896_v16   ;;  %v787_v16 = vpop.permute.xlu0 %786 }
 0x2d0   :  { %3303 = vset.pattern.permute.xlu1 %v3461_v9 }
 0x2d1   :  { %3020 = vmatpush3.bf16.msra.mxu0 %v592_v59  ;;  %977 = vperm.xlu1 %3303, %v900_v36  }
 0x2d2   :  { %3021 = vmatprep.subr.bf16.mxu0 %v593_v63 }
 0x2d3   :  { %1199 = vperm.xlu0 %3308, %v899_v24   ;;  %v795_v34 = vpop.permute.xlu0 %794 }
 0x2d5   :  { %3022 = vmatpush3.bf16.msra.mxu0 %v593_v63  ;;  %981 = vperm.xlu1 %3303, %v901_v28  }
 0x2d6   :  { %3023 = vmatprep.subr.bf16.mxu0 %v594_v1 }
 0x2d7   :  { %1207 = vperm.xlu0 %3308, %v901_v28  }
 0x2d9   :  { %3024 = vmatpush3.bf16.msra.mxu0 %v594_v1  ;;  %3305 = vset.pattern.permute.xlu1 %v3460_v3 }
 0x2da   :  { %937 = vperm.xlu1 %3305, %v902_v37  }
 0x2db   :  { %1215 = vperm.xlu0 %3308, %v903_v40  }
 0x2dc   :  { %3026 = vmatmul.mubr.bf16.vlgmr.msra.gmra.mrb[16].mxu0 %v3358_v4 }
 0x2dd   :  { %3029 = vmatprep.mubr.bf16.mxu0 %v3359_v5 }
 0x2de   :  { %942 = vperm.xlu1 %3305, %v903_v40  }
 0x2df   :  { %3311 = vset.pattern.permute.xlu0 %v3461_v9 }
 0x2e2   :  { %3307 = vset.pattern.permute.xlu1 %v3461_v9 }
 0x2e3   :  { %989 = vperm.xlu1 %3307, %v903_v40  }
 0x2e4   :  { %3030 = vmatmul.mubr.bf16.gmra.mrb[20].mxu0 %v3360_v6 }
 0x2e5   :  { %3033 = vmatprep.mubr.bf16.mxu0 %v3361_v7 }
 0x2e7   :  { %3309 = vset.pattern.permute.xlu1 %v3462_v27 }
 0x2e8   :  { %1191 = vperm.xlu1 %3309, %v897_v18  }
 0x2ec   :  { %3034 = vmatmul.mubr.bf16.gmra.mrb[24].mxu0 %v3362_v8  ;;  %1195 = vperm.xlu1 %3309, %v898_v21  }
 0x2ed   :  { %3037 = vmatprep.mubr.bf16.mxu0 %v3363_v10 }
 0x2f0   :  { %1203 = vperm.xlu1 %3309, %v900_v36  }
 0x2f4   :  { %3038 = vmatmul.mubr.bf16.gmra.mrb[28].mxu0 %v3364_v11  ;;  %1211 = vperm.xlu1 %3309, %v902_v37  }
 0x2f8   :  { %3310 = vset.pattern.permute.xlu1 %v3460_v3 }
 0x3af   :  { %v3027_v42 = vpop.f32.mrb[16].mxu0 }
 0x3b0   :  { %v694_v43 = vpop.f32.mrb[17].mxu0 }
 0x3b1   :  { %v3028_v44 = vpop.f32.mrb[18].mxu0 }
 0x3b2   :  { %v758_v45 = vpack.c.bf16 %v3028_v44, %v3027_v42  ;;  %v697_v46 = vpop.f32.mrb[19].mxu0  ;;  %v2665_v42 = vld [vmem:[%s4173_s3 + $0x10] sm:$0xf]  ;;  %v908_v44 = vpop.permute.xlu1 %907 }
 0x3b3   :  { %v757_v47 = vpack.c.bf16 %v697_v46, %v694_v43  ;;  %v3365_v43 = vld [vmem:[%s4172_s2 + $0xc0] sm:$0xff]  }
 0x3b4   :  { %v798_v49 = vadd.bf16 %v771_v48, %v758_v45  ;;  %3077 = vmatprep.mubr.bf16.mxu0 %v3365_v43  ;;  %v864_v45 = vstv %s2666_s30 }
 0x3b5   :  { %v797_v50 = vadd.bf16 %v767_v41, %v757_v47 }
 0x3b6   :  { %v806_v54 = vmul.bf16 1009007652, %v798_v49 }
 0x3b7   :  { %v805_v51 = vmul.bf16 1009007652, %v797_v50  ;;  %v3031_v52 = vpop.f32.mrb[20].mxu0 }
 0x3b8   :  { %v710_v53 = vpop.f32.mrb[21].mxu0  ;;  %v814_v62 = vmax.bf16 %v806_v54, %v798_v49 }
 0x3b9   :  { %v813_v55 = vmax.bf16 %v805_v51, %v797_v50  ;;  %v3032_v56 = vpop.f32.mrb[22].mxu0  ;;  %v913_v51 = vpop.permute.xlu1 %912 }
 0x3ba   :  { %v760_v57 = vpack.c.bf16 %v3032_v56, %v3031_v52  ;;  %v713_v58 = vpop.f32.mrb[23].mxu0 }
 0x3bb   :  { %v759_v59 = vpack.c.bf16 %v713_v58, %v710_v53  ;;  %3042 = vmatpush3.bf16.msra.mxu1 %v813_v55  ;;  %v868_v55 = vstv %s2667_s6 }
 0x3bc   :  { %3043 = vmatprep.subr.bf16.mxu1 %v3463_v30  ;;  %v800_v63 = vadd.bf16 %v779_v60, %v760_v57 }
 0x3bd   :  { %v799_v1 = vadd.bf16 %v775_v61, %v759_v59  ;;  %v966_v52 = vpop.permute.xlu1 %965 }
 0x3be   :  { %v808_v7 = vmul.bf16 1009007652, %v800_v63 }
 0x3bf   :  { %v807_v4 = vmul.bf16 1009007652, %v799_v1  ;;  %v3035_v5 = vpop.f32.mrb[24].mxu0  ;;  %3044 = vmatpush3.bf16.msra.mxu1 %v814_v62 }
 0x3c0   :  { %v726_v6 = vpop.f32.mrb[25].mxu0  ;;  %3045 = vmatprep.subr.bf16.mxu1 %v3463_v30  ;;  %v816_v17 = vmax.bf16 %v808_v7, %v800_v63 }
 0x3c1   :  { %v815_v8 = vmax.bf16 %v807_v4, %v799_v1  ;;  %v3036_v10 = vpop.f32.mrb[26].mxu0  ;;  %v970_v57 = vpop.permute.xlu1 %969 }
 0x3c2   :  { %v762_v11 = vpack.c.bf16 %v3036_v10, %v3035_v5  ;;  %v729_v12 = vpop.f32.mrb[27].mxu0  ;;  %v962_v4 = vpop.permute.xlu0 %961 }
 0x3c3   :  { %v761_v13 = vpack.c.bf16 %v729_v12, %v726_v6  ;;  %3046 = vmatpush3.bf16.msra.mxu1 %v815_v8 }
 0x3c4   :  { %3047 = vmatprep.subr.bf16.mxu1 %v3463_v30  ;;  %v802_v18 = vadd.bf16 %v787_v16, %v762_v11 }
 0x3c5   :  { %v801_v19 = vadd.bf16 %v783_v15, %v761_v13  ;;  %v923_v59 = vpop.permute.xlu1 %922 }
 0x3c6   :  { %v810_v23 = vmul.bf16 1009007652, %v802_v18  ;;  %v918_v10 = vpop.permute.xlu0 %917 }
 0x3c7   :  { %v809_v20 = vmul.bf16 1009007652, %v801_v19  ;;  %v3039_v21 = vpop.f32.mrb[28].mxu0  ;;  %3048 = vmatpush3.bf16.msra.mxu1 %v816_v17 }
 0x3c8   :  { %v742_v22 = vpop.f32.mrb[29].mxu0  ;;  %3049 = vmatprep.subr.bf16.mxu1 %v3463_v30  ;;  %v818_v35 = vmax.bf16 %v810_v23, %v802_v18 }
 0x3c9   :  { %v817_v24 = vmax.bf16 %v809_v20, %v801_v19  ;;  %v3040_v25 = vpop.f32.mrb[30].mxu0  ;;  %v928_v63 = vpop.permute.xlu1 %927 }
 0x3ca   :  { %v764_v26 = vpack.c.bf16 %v3040_v25, %v3039_v21  ;;  %v745_v28 = vpop.f32.mrb[31].mxu0  ;;  %v974_v21 = vpop.permute.xlu0 %973 }
 0x3cb   :  { %v763_v31 = vpack.c.bf16 %v745_v28, %v742_v22  ;;  %3050 = vmatpush3.bf16.msra.mxu1 %v817_v24 }
 0x3cc   :  { %3051 = vmatprep.subr.bf16.mxu1 %v3463_v30  ;;  %v804_v36 = vadd.bf16 %v795_v34, %v764_v26 }
 0x3cd   :  { %v803_v37 = vadd.bf16 %v791_v33, %v763_v31  ;;  %v978_v7 = vpop.permute.xlu1 %977 }
 0x3ce   :  { %v812_v39 = vmul.bf16 1009007652, %v804_v36  ;;  %v933_v31 = vpop.permute.xlu0 %932 }
 0x3cf   :  { %v811_v38 = vmul.bf16 1009007652, %v803_v37  ;;  %3052 = vmatpush3.bf16.msra.mxu1 %v818_v35 }
 0x3d0   :  { %3053 = vmatprep.subr.bf16.mxu1 %v3463_v30  ;;  %v820_v41 = vmax.bf16 %v812_v39, %v804_v36 }
 0x3d1   :  { %v819_v40 = vmax.bf16 %v811_v38, %v803_v37  ;;  %v982_v17 = vpop.permute.xlu1 %981 }
 0x3d3   :  { %3054 = vmatpush3.bf16.msra.mxu1 %v819_v40 }
 0x3d4   :  { %3055 = vmatprep.subr.bf16.mxu1 %v3463_v30 }
 0x3d5   :  { %v938_v28 = vpop.permute.xlu1 %937 }
 0x3d7   :  { %3056 = vmatpush3.bf16.msra.mxu1 %v820_v41 }
 0x3d8   :  { %3093 = vmatprep.subr.bf16.mxu1 %v3463_v30 }
 0x3d9   :  { %v943_v37 = vpop.permute.xlu1 %942 }
 0x3da   :  { %3058 = vmatmul.mubr.bf16.vlgmr.msra.gmra.mrb[4].mxu1 %v2665_v42  ;;  %v986_v42 = vpop.permute.xlu0 %985 }
 0x3db   :  { %3109 = vmatprep.mubr.msk.bf16.mxu1 %vm3464_vm0, %v3463_v30 }
 0x4ad   :  { %v857_v46 = vpop.f32.mrb[4].mxu1 }
 0x4ae   :  { %v865_v47 = vadd.f32 %v864_v45, %v857_v46  ;;  %v3059_v48 = vpop.f32.mrb[5].mxu1  ;;  %v869_v58 = vadd.f32 %v868_v55, %v857_v46  ;;  %v3366_v55 = vld [vmem:[%s4172_s2 + $0xc8] sm:$0xff]  }
 0x4af   :  { %v860_v49 = vpop.f32.mrb[6].mxu1 }
 0x4b0   :  { %3401 = vtanh.f32 %v865_v47  ;;  %v3060_v50 = vpop.f32.mrb[7].mxu1  ;;  %v871_v60 = vrot.slane %v869_v58, 1  ;;  %v990_v47 = vpop.permute.xlu1 %989  ;;  %v3369_v58 = vld [vmem:[%s4172_s2 + $0xe0] sm:$0xff]  }
 0x4b2   :  { %v873_v61 = vsub.f32 %v3562_v29, %v871_v60  ;;  %v3371_v60 = vld [vmem:[%s4172_s2 + $0xf0] sm:$0xff]  }
 0x4ba   :  { %v3782_v53 = vpop.eup %3401 }
 0x4bb   :  { %v874_v54 = vsub.f32 0.0, %v3782_v53 }
 0x4bd   :  { %v875_v56 = vmul.f32 1.442695, %v874_v54 }
 0x4bf   :  { %3403 = vpow2.f32 %v875_v56  ;;  %v3367_v56 = vld [vmem:[%s4172_s2 + $0xd0] sm:$0xff]  }
 0x4c9   :  { %v3404_v62 = vpop.eup %3403 }
 0x4ca   :  { %v3786_v1 = vmul.f32 %v3404_v62, %v873_v61  ;;  %v3372_v61 = vld [vmem:[%s4172_s2 + $0xf8] sm:$0xff]   ;;  %v2711_v62 = vld [vmem:[%s4171_s1 + $0x100] sm:$0xff] }
 0x4cc   :  { %v904_v5 = vpack.c.bf16 %v3786_v1, %v3786_v1 }
 0x4ce   :  { %v946_v6 = vpack.i.b16 %v904_v5, %v904_v5 }
 0x4d0   :  { %v951_v8 = vrot.slane %v946_v6, %v3566_v32  ;;  %v2714_v6 = vld [vmem:[%s4171_s1 + $0x118] sm:$0xff] }
 0x4d2   :  { %v953_v11 = vmul.bf16 %v951_v8, %v913_v51  ;;  %v952_v12 = vmul.bf16 %v951_v8, %v908_v44  ;;  %v954_v13 = vmul.bf16 %v951_v8, %v918_v10  ;;  %v955_v18 = vmul.bf16 %v951_v8, %v923_v59  ;;  %v3370_v59 = vld [vmem:[%s4172_s2 + $0xe8] sm:$0xff]  }
 0x4d3   :  { %v956_v24 = vmul.bf16 %v951_v8, %v928_v63  ;;  %v957_v35 = vmul.bf16 %v951_v8, %v933_v31  ;;  %v958_v39 = vmul.bf16 %v951_v8, %v938_v28  ;;  %v959_v44 = vmul.bf16 %v951_v8, %v943_v37  ;;  %v2712_v63 = vld [vmem:[%s4171_s1 + $0x108] sm:$0xff]  ;;  %v2715_v8 = vld [vmem:[%s4171_s1 + $0x120] sm:$0xff]  ;;  %v1188_v37 = vpop.permute.xlu0 %1187 }
 0x4d4   :  { %v993_v15 = vadd.bf16 %v966_v52, %v953_v11  ;;  %v992_v16 = vadd.bf16 %v962_v4, %v952_v12  ;;  %v994_v20 = vadd.bf16 %v970_v57, %v954_v13  ;;  %v995_v26 = vadd.bf16 %v974_v21, %v955_v18  ;;  %v3368_v57 = vld [vmem:[%s4172_s2 + $0xd8] sm:$0xff]   ;;  %v2713_v4 = vld [vmem:[%s4171_s1 + $0x110] sm:$0xff]  ;;  %v2716_v10 = vld [vmem:[%s4171_s1 + $0x128] sm:$0xff] }
 0x4d5   :  { %v996_v33 = vadd.bf16 %v978_v7, %v956_v24  ;;  %v997_v41 = vadd.bf16 %v982_v17, %v957_v35  ;;  %v998_v46 = vadd.bf16 %v986_v42, %v958_v39  ;;  %v999_v48 = vadd.bf16 %v990_v47, %v959_v44  ;;  %v2717_v12 = vld [vmem:[%s4171_s1 + $0x130] sm:$0xff]  ;;  %v2718_v13 = vld [vmem:[%s4171_s1 + $0x138] sm:$0xff]  ;;  %v2719_v18 = vld [vmem:[%s4171_s1 + $0x140] sm:$0xff] }
 0x4d6   :  { %v1001_v29 = vmul.bf16 1009007652, %v993_v15  ;;  %v1000_v19 = vmul.bf16 1009007652, %v992_v16  ;;  %v1002_v25 = vmul.bf16 1009007652, %v994_v20  ;;  %v1317_v5 = vpack.c.bf16 %v2712_v63, %v2711_v62 }
 0x4d7   :  { %v1003_v34 = vmul.bf16 1009007652, %v995_v26  ;;  %v1004_v38 = vmul.bf16 1009007652, %v996_v33  ;;  %v1005_v45 = vmul.bf16 1009007652, %v997_v41  ;;  %v1318_v7 = vpack.c.bf16 %v2714_v6, %v2713_v4 }
 0x4d8   :  { %v1008_v22 = vmax.bf16 %v1000_v19, %v992_v16  ;;  %v1009_v23 = vmax.bf16 %v1001_v29, %v993_v15  ;;  %v1010_v36 = vmax.bf16 %v1002_v25, %v994_v20  ;;  %v1006_v49 = vmul.bf16 1009007652, %v998_v46  ;;  %1328 = vperm.xlu1 %3310, %v1317_v5   ;;  %1382 = vperm.xlu0 %3311, %v1317_v5   ;;  %v2721_v16 = vld [vmem:[%s4171_s1 + $0x150] sm:$0xff]  ;;  %v2722_v17 = vld [vmem:[%s4171_s1 + $0x158] sm:$0xff]  ;;  %v2720_v19 = vld [vmem:[%s4171_s1 + $0x148] sm:$0xff] }
 0x4d9   :  { %v1011_v40 = vmax.bf16 %v1003_v34, %v995_v26  ;;  %v1012_v43 = vmax.bf16 %v1004_v38, %v996_v33  ;;  %v1013_v50 = vmax.bf16 %v1005_v45, %v997_v41  ;;  %v1007_v51 = vmul.bf16 1009007652, %v999_v48  ;;  %v2723_v20 = vld [vmem:[%s4171_s1 + $0x160] sm:$0xff]  ;;  %v2724_v21 = vld [vmem:[%s4171_s1 + $0x168] sm:$0xff]  ;;  %v2725_v24 = vld [vmem:[%s4171_s1 + $0x170] sm:$0xff]  ;;  %v1192_v38 = vpop.permute.xlu1 %1191 }
 0x4da   :  { %3061 = vmatprep.subr.bf16.mxu0 %v1008_v22  ;;  %v1014_v52 = vmax.bf16 %v1006_v49, %v998_v46  ;;  %v1319_v11 = vpack.c.bf16 %v2716_v10, %v2715_v8  ;;  %v1320_v15 = vpack.c.bf16 %v2718_v13, %v2717_v12  ;;  %v1322_v29 = vpack.c.bf16 %v2722_v17, %v2721_v16  ;;  %v2726_v25 = vld [vmem:[%s4171_s1 + $0x178] sm:$0xff] }
 0x4db   :  { %3062 = vmatpush3.bf16.msra.mxu0 %v1008_v22  ;;  %v1015_v54 = vmax.bf16 %v1007_v51, %v999_v48  ;;  %v1321_v22 = vpack.c.bf16 %v2720_v19, %v2719_v18  ;;  %v1324_v26 = vpack.c.bf16 %v2726_v25, %v2725_v24 }
 0x4dc   :  { %3063 = vmatprep.subr.bf16.mxu0 %v1009_v23  ;;  %1333 = vperm.xlu1 %3310, %v1318_v7  }
 0x4dd   :  { %3313 = vset.pattern.permute.xlu0 %v3460_v3  ;;  %v1196_v51 = vpop.permute.xlu1 %1195 }
 0x4de   :  { %1338 = vperm.xlu0 %3313, %v1319_v11  }
 0x4df   :  { %3064 = vmatpush3.bf16.msra.mxu0 %v1009_v23  ;;  %v1323_v23 = vpack.c.bf16 %v2724_v21, %v2723_v20 }
 0x4e0   :  { %3065 = vmatprep.subr.bf16.mxu0 %v1010_v36  ;;  %3312 = vset.pattern.permute.xlu1 %v3461_v9 }
 0x4e1   :  { %1386 = vperm.xlu1 %3312, %v1318_v7   ;;  %v1204_v6 = vpop.permute.xlu1 %1203 }
 0x4e2   :  { %3315 = vset.pattern.permute.xlu0 %v3461_v9 }
 0x4e3   :  { %3066 = vmatpush3.bf16.msra.mxu0 %v1010_v36  ;;  %1394 = vperm.xlu0 %3315, %v1320_v15  }
 0x4e4   :  { %3067 = vmatprep.subr.bf16.mxu0 %v1011_v40 }
 0x4e5   :  { %1390 = vperm.xlu1 %3312, %v1319_v11   ;;  %v1212_v21 = vpop.permute.xlu1 %1211 }
 0x4e7   :  { %3068 = vmatpush3.bf16.msra.mxu0 %v1011_v40  ;;  %3317 = vset.pattern.permute.xlu0 %v3460_v3 }
 0x4e8   :  { %3069 = vmatprep.subr.bf16.mxu0 %v1012_v43  ;;  %1353 = vperm.xlu0 %3317, %v1322_v29  }
 0x4e9   :  { %3314 = vset.pattern.permute.xlu1 %v3460_v3 }
 0x4ea   :  { %1343 = vperm.xlu1 %3314, %v1320_v15  }
 0x4eb   :  { %3070 = vmatpush3.bf16.msra.mxu0 %v1012_v43 }
 0x4ec   :  { %3071 = vmatprep.subr.bf16.mxu0 %v1013_v50  ;;  %3319 = vset.pattern.permute.xlu0 %v3461_v9 }
 0x4ed   :  { %1406 = vperm.xlu0 %3319, %v1323_v23  }
 0x4ee   :  { %1348 = vperm.xlu1 %3314, %v1321_v22  }
 0x4ef   :  { %3072 = vmatpush3.bf16.msra.mxu0 %v1013_v50  ;;  %v1200_v50 = vpop.permute.xlu0 %1199 }
 0x4f0   :  { %3073 = vmatprep.subr.bf16.mxu0 %v1014_v52 }
 0x4f1   :  { %3321 = vset.pattern.permute.xlu0 %v3462_v27 }
 0x4f2   :  { %1608 = vperm.xlu0 %3321, %v1317_v5   ;;  %3316 = vset.pattern.permute.xlu1 %v3461_v9 }
 0x4f3   :  { %3074 = vmatpush3.bf16.msra.mxu0 %v1014_v52  ;;  %1398 = vperm.xlu1 %3316, %v1321_v22   ;;  %v1208_v5 = vpop.permute.xlu0 %1207 }
 0x4f4   :  { %3075 = vmatprep.subr.bf16.mxu0 %v1015_v54 }
 0x4f6   :  { %1620 = vperm.xlu0 %3321, %v1320_v15  }
 0x4f7   :  { %3076 = vmatpush3.bf16.msra.mxu0 %v1015_v54  ;;  %1402 = vperm.xlu1 %3316, %v1322_v29   ;;  %v1216_v20 = vpop.permute.xlu0 %1215 }
 0x4fa   :  { %3078 = vmatmul.mubr.bf16.vlgmr.msra.gmra.mrb[32].mxu0 %v3366_v55  ;;  %1628 = vperm.xlu0 %3321, %v1322_v29  }
 0x4fb   :  { %3081 = vmatprep.mubr.bf16.mxu0 %v3367_v56  ;;  %3318 = vset.pattern.permute.xlu1 %v3460_v3 }
 0x4fc   :  { %1358 = vperm.xlu1 %3318, %v1323_v23  }
 0x4fe   :  { %1636 = vperm.xlu0 %3321, %v1324_v26  }
 0x500   :  { %1363 = vperm.xlu1 %3318, %v1324_v26  }
 0x502   :  { %3082 = vmatmul.mubr.bf16.gmra.mrb[36].mxu0 %v3368_v57  ;;  %3324 = vset.pattern.permute.xlu0 %v3461_v9 }
 0x503   :  { %3085 = vmatprep.mubr.bf16.mxu0 %v3369_v58 }
 0x504   :  { %3320 = vset.pattern.permute.xlu1 %v3461_v9 }
 0x505   :  { %1410 = vperm.xlu1 %3320, %v1324_v26  }
 0x509   :  { %3322 = vset.pattern.permute.xlu1 %v3462_v27 }
 0x50a   :  { %3086 = vmatmul.mubr.bf16.gmra.mrb[40].mxu0 %v3370_v59  ;;  %1612 = vperm.xlu1 %3322, %v1318_v7  }
 0x50b   :  { %3089 = vmatprep.mubr.bf16.mxu0 %v3371_v60 }
 0x50e   :  { %1616 = vperm.xlu1 %3322, %v1319_v11  }
 0x512   :  { %3090 = vmatmul.mubr.bf16.gmra.mrb[44].mxu0 %v3372_v61  ;;  %1624 = vperm.xlu1 %3322, %v1321_v22  }
 0x516   :  { %1632 = vperm.xlu1 %3322, %v1323_v23  }
 0x51a   :  { %3323 = vset.pattern.permute.xlu1 %v3460_v3 }
 0x5cd   :  { %v3079_v28 = vpop.f32.mrb[32].mxu0 }
 0x5ce   :  { %v1115_v31 = vpop.f32.mrb[33].mxu0 }
 0x5cf   :  { %v3080_v33 = vpop.f32.mrb[34].mxu0 }
 0x5d0   :  { %v1179_v34 = vpack.c.bf16 %v3080_v33, %v3079_v28  ;;  %v1118_v35 = vpop.f32.mrb[35].mxu0  ;;  %v2708_v33 = vld [vmem:[%s4173_s3 + $0xc] sm:$0xf] }
 0x5d1   :  { %v1178_v36 = vpack.c.bf16 %v1118_v35, %v1115_v31  ;;  %v1329_v35 = vpop.permute.xlu1 %1328 }
 0x5d2   :  { %v1219_v39 = vadd.bf16 %v1192_v38, %v1179_v34  ;;  %v3373_v34 = vld [vmem:[%s4172_s2 + $0x80] sm:$0xff]  }
 0x5d3   :  { %v1218_v40 = vadd.bf16 %v1188_v37, %v1178_v36  ;;  %3129 = vmatprep.mubr.bf16.mxu0 %v3373_v34  ;;  %v1285_v36 = vstv %s2709_s28 }
 0x5d4   :  { %v1227_v44 = vmul.bf16 1009007652, %v1219_v39 }
 0x5d5   :  { %v1226_v41 = vmul.bf16 1009007652, %v1218_v40  ;;  %v3083_v42 = vpop.f32.mrb[36].mxu0 }
 0x5d6   :  { %v1131_v43 = vpop.f32.mrb[37].mxu0  ;;  %v1235_v52 = vmax.bf16 %v1227_v44, %v1219_v39  ;;  %v3892_v44 = vsub.f32 %v454_v2, %v3782_v53  ;;  %v1383_v53 = vpop.permute.xlu0 %1382 }
 0x5d7   :  { %v1234_v45 = vmax.bf16 %v1226_v41, %v1218_v40  ;;  %v3084_v46 = vpop.f32.mrb[38].mxu0 }
 0x5d8   :  { %v1181_v47 = vpack.c.bf16 %v3084_v46, %v3083_v42  ;;  %v1134_v48 = vpop.f32.mrb[39].mxu0  ;;  %v1334_v42 = vpop.permute.xlu1 %1333 }
 0x5d9   :  { %v1180_v49 = vpack.c.bf16 %v1134_v48, %v1131_v43  ;;  %3094 = vmatpush3.bf16.msra.mxu1 %v1234_v45  ;;  %v1289_v48 = vstv %s2710_s29 }
 0x5da   :  { %3095 = vmatprep.subr.bf16.mxu1 %v3463_v30  ;;  %v1221_v54 = vadd.bf16 %v1200_v50, %v1181_v47 }
 0x5db   :  { %v1220_v55 = vadd.bf16 %v1196_v51, %v1180_v49 }
 0x5dc   :  { %v1229_v59 = vmul.bf16 1009007652, %v1221_v54  ;;  %v1387_v43 = vpop.permute.xlu1 %1386 }
 0x5dd   :  { %v1228_v56 = vmul.bf16 1009007652, %v1220_v55  ;;  %v3087_v57 = vpop.f32.mrb[40].mxu0  ;;  %3096 = vmatpush3.bf16.msra.mxu1 %v1235_v52 }
 0x5de   :  { %v1147_v58 = vpop.f32.mrb[41].mxu0  ;;  %3097 = vmatprep.subr.bf16.mxu1 %v3463_v30  ;;  %v1237_v7 = vmax.bf16 %v1229_v59, %v1221_v54 }
 0x5df   :  { %v1236_v60 = vmax.bf16 %v1228_v56, %v1220_v55  ;;  %v3088_v61 = vpop.f32.mrb[42].mxu0 }
 0x5e0   :  { %v1183_v62 = vpack.c.bf16 %v3088_v61, %v3087_v57  ;;  %v1150_v63 = vpop.f32.mrb[43].mxu0  ;;  %v1391_v50 = vpop.permute.xlu1 %1390 }
 0x5e1   :  { %v1182_v4 = vpack.c.bf16 %v1150_v63, %v1147_v58  ;;  %3098 = vmatpush3.bf16.msra.mxu1 %v1236_v60  ;;  %v1339_v61 = vpop.permute.xlu0 %1338 }
 0x5e2   :  { %3099 = vmatprep.subr.bf16.mxu1 %v3463_v30  ;;  %v1223_v8 = vadd.bf16 %v1208_v5, %v1183_v62 }
 0x5e3   :  { %v1222_v10 = vadd.bf16 %v1204_v6, %v1182_v4 }
 0x5e4   :  { %v1231_v15 = vmul.bf16 1009007652, %v1223_v8  ;;  %v1344_v52 = vpop.permute.xlu1 %1343 }
 0x5e5   :  { %v1230_v11 = vmul.bf16 1009007652, %v1222_v10  ;;  %v3091_v12 = vpop.f32.mrb[44].mxu0  ;;  %3100 = vmatpush3.bf16.msra.mxu1 %v1237_v7 }
 0x5e6   :  { %v1163_v13 = vpop.f32.mrb[45].mxu0  ;;  %3101 = vmatprep.subr.bf16.mxu1 %v3463_v30  ;;  %v1239_v22 = vmax.bf16 %v1231_v15, %v1223_v8 }
 0x5e7   :  { %v1238_v16 = vmax.bf16 %v1230_v11, %v1222_v10  ;;  %v3092_v17 = vpop.f32.mrb[46].mxu0 }
 0x5e8   :  { %v1185_v29 = vpack.c.bf16 %v3092_v17, %v3091_v12  ;;  %v1166_v18 = vpop.f32.mrb[47].mxu0  ;;  %v1349_v0 = vpop.permute.xlu1 %1348 }
 0x5e9   :  { %v1184_v19 = vpack.c.bf16 %v1166_v18, %v1163_v13  ;;  %3102 = vmatpush3.bf16.msra.mxu1 %v1238_v16  ;;  %v1395_v12 = vpop.permute.xlu0 %1394 }
 0x5ea   :  { %3103 = vmatprep.subr.bf16.mxu1 %v3463_v30  ;;  %v1225_v23 = vadd.bf16 %v1216_v20, %v1185_v29 }
 0x5eb   :  { %v1224_v24 = vadd.bf16 %v1212_v21, %v1184_v19 }
 0x5ec   :  { %v1233_v26 = vmul.bf16 1009007652, %v1225_v23  ;;  %v1399_v59 = vpop.permute.xlu1 %1398 }
 0x5ed   :  { %v1232_v25 = vmul.bf16 1009007652, %v1224_v24  ;;  %3104 = vmatpush3.bf16.msra.mxu1 %v1239_v22  ;;  %v1354_v19 = vpop.permute.xlu0 %1353 }
 0x5ee   :  { %3105 = vmatprep.subr.bf16.mxu1 %v3463_v30  ;;  %v1241_v31 = vmax.bf16 %v1233_v26, %v1225_v23 }
 0x5ef   :  { %v1240_v28 = vmax.bf16 %v1232_v25, %v1224_v24 }
 0x5f0   :  { %v1403_v7 = vpop.permute.xlu1 %1402 }
 0x5f1   :  { %3106 = vmatpush3.bf16.msra.mxu1 %v1240_v28 }
 0x5f2   :  { %3107 = vmatprep.subr.bf16.mxu1 %v3463_v30 }
 0x5f4   :  { %v1359_v18 = vpop.permute.xlu1 %1358 }
 0x5f5   :  { %3108 = vmatpush3.bf16.msra.mxu1 %v1241_v31 }
 0x5f6   :  { %3145 = vmatprep.subr.bf16.mxu1 %v3463_v30 }
 0x5f8   :  { %3110 = vmatmul.mubr.bf16.vlgmr.msra.gmra.mrb[8].mxu1 %v2708_v33  ;;  %v1364_v24 = vpop.permute.xlu1 %1363  ;;  %v1407_v33 = vpop.permute.xlu0 %1406 }
 0x5f9   :  { %3161 = vmatprep.mubr.msk.bf16.mxu1 %vm3464_vm0, %v3463_v30 }
 0x6cb   :  { %v1278_v37 = vpop.f32.mrb[8].mxu1 }
 0x6cc   :  { %v1286_v38 = vadd.f32 %v1285_v36, %v1278_v37  ;;  %v3111_v39 = vpop.f32.mrb[9].mxu1  ;;  %v1290_v51 = vadd.f32 %v1289_v48, %v1278_v37  ;;  %v3374_v48 = vld [vmem:[%s4172_s2 + $0x88] sm:$0xff]  }
 0x6cd   :  { %v1281_v40 = vpop.f32.mrb[10].mxu1 }
 0x6ce   :  { %3405 = vtanh.f32 %v1286_v38  ;;  %v3112_v41 = vpop.f32.mrb[11].mxu1  ;;  %v1292_v54 = vrot.slane %v1290_v51, 1  ;;  %v1411_v38 = vpop.permute.xlu1 %1410  ;;  %v3377_v51 = vld [vmem:[%s4172_s2 + $0xa0] sm:$0xff]  }
 0x6d0   :  { %v1294_v55 = vsub.f32 %v3679_v14, %v1292_v54  ;;  %v3379_v54 = vld [vmem:[%s4172_s2 + $0xb0] sm:$0xff]  }
 0x6d8   :  { %v3894_v45 = vpop.eup %3405 }
 0x6d9   :  { %v1295_v46 = vsub.f32 0.0, %v3894_v45  ;;  %v1299_v47 = vsub.f32 %v3892_v44, %v3894_v45 }
 0x6db   :  { %v1296_v49 = vmul.f32 1.442695, %v1295_v46 }
 0x6dd   :  { %3407 = vpow2.f32 %v1296_v49  ;;  %v3375_v49 = vld [vmem:[%s4172_s2 + $0x90] sm:$0xff]  }
 0x6e7   :  { %v3408_v56 = vpop.eup %3407 }
 0x6e8   :  { %v3900_v2 = vmul.f32 %v3408_v56, %v1294_v55  ;;  %v3380_v55 = vld [vmem:[%s4172_s2 + $0xb8] sm:$0xff]   ;;  %v2754_v56 = vld [vmem:[%s4171_s1 + $0x80] sm:$0xff] }
 0x6ea   :  { %v1325_v57 = vpack.c.bf16 %v3900_v2, %v3900_v2 }
 0x6ec   :  { %v1367_v58 = vpack.i.b16 %v1325_v57, %v1325_v57 }
 0x6ee   :  { %v1372_v60 = vrot.slane %v1367_v58, %v3566_v32  ;;  %v2757_v58 = vld [vmem:[%s4171_s1 + $0x98] sm:$0xff] }
 0x6f0   :  { %v1374_v62 = vmul.bf16 %v1372_v60, %v1334_v42  ;;  %v1373_v63 = vmul.bf16 %v1372_v60, %v1329_v35  ;;  %v1375_v4 = vmul.bf16 %v1372_v60, %v1339_v61  ;;  %v1376_v8 = vmul.bf16 %v1372_v60, %v1344_v52  ;;  %v3378_v52 = vld [vmem:[%s4172_s2 + $0xa8] sm:$0xff]  }
 0x6f1   :  { %v1377_v16 = vmul.bf16 %v1372_v60, %v1349_v0  ;;  %v1378_v22 = vmul.bf16 %v1372_v60, %v1354_v19  ;;  %v1379_v26 = vmul.bf16 %v1372_v60, %v1359_v18  ;;  %v1380_v35 = vmul.bf16 %v1372_v60, %v1364_v24  ;;  %v2755_v0 = vld [vmem:[%s4171_s1 + $0x88] sm:$0xff]  ;;  %v2758_v60 = vld [vmem:[%s4171_s1 + $0xa0] sm:$0xff]  ;;  %v1609_v24 = vpop.permute.xlu0 %1608 }
 0x6f2   :  { %v1414_v5 = vadd.bf16 %v1387_v43, %v1374_v62  ;;  %v1413_v6 = vadd.bf16 %v1383_v53, %v1373_v63  ;;  %v1415_v11 = vadd.bf16 %v1391_v50, %v1375_v4  ;;  %v1416_v29 = vadd.bf16 %v1395_v12, %v1376_v8  ;;  %v3376_v50 = vld [vmem:[%s4172_s2 + $0x98] sm:$0xff]   ;;  %v2756_v53 = vld [vmem:[%s4171_s1 + $0x90] sm:$0xff]  ;;  %v2759_v61 = vld [vmem:[%s4171_s1 + $0xa8] sm:$0xff] }
 0x6f3   :  { %v1417_v20 = vadd.bf16 %v1399_v59, %v1377_v16  ;;  %v1418_v31 = vadd.bf16 %v1403_v7, %v1378_v22  ;;  %v1419_v37 = vadd.bf16 %v1407_v33, %v1379_v26  ;;  %v1420_v39 = vadd.bf16 %v1411_v38, %v1380_v35  ;;  %v2760_v63 = vld [vmem:[%s4171_s1 + $0xb0] sm:$0xff]  ;;  %v2761_v4 = vld [vmem:[%s4171_s1 + $0xb8] sm:$0xff]  ;;  %v2762_v8 = vld [vmem:[%s4171_s1 + $0xc0] sm:$0xff] }
 0x6f4   :  { %v1422_v14 = vmul.bf16 1009007652, %v1414_v5  ;;  %v1421_v10 = vmul.bf16 1009007652, %v1413_v6  ;;  %v1423_v17 = vmul.bf16 1009007652, %v1415_v11  ;;  %v1738_v57 = vpack.c.bf16 %v2755_v0, %v2754_v56 }
 0x6f5   :  { %v1424_v21 = vmul.bf16 1009007652, %v1416_v29  ;;  %v1425_v25 = vmul.bf16 1009007652, %v1417_v20  ;;  %v1426_v36 = vmul.bf16 1009007652, %v1418_v31  ;;  %v1739_v59 = vpack.c.bf16 %v2757_v58, %v2756_v53 }
 0x6f6   :  { %v1429_v13 = vmax.bf16 %v1421_v10, %v1413_v6  ;;  %v1430_v15 = vmax.bf16 %v1422_v14, %v1414_v5  ;;  %v1431_v23 = vmax.bf16 %v1423_v17, %v1415_v11  ;;  %v1427_v40 = vmul.bf16 1009007652, %v1419_v37  ;;  %1749 = vperm.xlu1 %3323, %v1738_v57   ;;  %1803 = vperm.xlu0 %3324, %v1738_v57   ;;  %v2764_v6 = vld [vmem:[%s4171_s1 + $0xd0] sm:$0xff]  ;;  %v2765_v7 = vld [vmem:[%s4171_s1 + $0xd8] sm:$0xff]  ;;  %v2763_v10 = vld [vmem:[%s4171_s1 + $0xc8] sm:$0xff] }
 0x6f7   :  { %v1432_v28 = vmax.bf16 %v1424_v21, %v1416_v29  ;;  %v1433_v34 = vmax.bf16 %v1425_v25, %v1417_v20  ;;  %v1434_v41 = vmax.bf16 %v1426_v36, %v1418_v31  ;;  %v1428_v42 = vmul.bf16 1009007652, %v1420_v39  ;;  %v2766_v11 = vld [vmem:[%s4171_s1 + $0xe0] sm:$0xff]  ;;  %v2767_v12 = vld [vmem:[%s4171_s1 + $0xe8] sm:$0xff]  ;;  %v2768_v16 = vld [vmem:[%s4171_s1 + $0xf0] sm:$0xff]  ;;  %v1613_v25 = vpop.permute.xlu1 %1612 }
 0x6f8   :  { %3113 = vmatprep.subr.bf16.mxu0 %v1429_v13  ;;  %v1435_v43 = vmax.bf16 %v1427_v40, %v1419_v37  ;;  %v1740_v62 = vpack.c.bf16 %v2759_v61, %v2758_v60  ;;  %v1741_v5 = vpack.c.bf16 %v2761_v4, %v2760_v63  ;;  %v1743_v14 = vpack.c.bf16 %v2765_v7, %v2764_v6  ;;  %v2769_v17 = vld [vmem:[%s4171_s1 + $0xf8] sm:$0xff] }
 0x6f9   :  { %3114 = vmatpush3.bf16.msra.mxu0 %v1429_v13  ;;  %v1436_v46 = vmax.bf16 %v1428_v42, %v1420_v39  ;;  %v1742_v13 = vpack.c.bf16 %v2763_v10, %v2762_v8  ;;  %v1745_v29 = vpack.c.bf16 %v2769_v17, %v2768_v16 }
 0x6fa   :  { %3115 = vmatprep.subr.bf16.mxu0 %v1430_v15  ;;  %1754 = vperm.xlu1 %3323, %v1739_v59  }
 0x6fb   :  { %3326 = vset.pattern.permute.xlu0 %v3460_v3  ;;  %v1617_v42 = vpop.permute.xlu1 %1616 }
 0x6fc   :  { %1759 = vperm.xlu0 %3326, %v1740_v62  }
 0x6fd   :  { %3116 = vmatpush3.bf16.msra.mxu0 %v1430_v15  ;;  %v1744_v15 = vpack.c.bf16 %v2767_v12, %v2766_v11 }
 0x6fe   :  { %3117 = vmatprep.subr.bf16.mxu0 %v1431_v23  ;;  %3325 = vset.pattern.permute.xlu1 %v3461_v9 }
 0x6ff   :  { %1807 = vperm.xlu1 %3325, %v1739_v59   ;;  %v1625_v58 = vpop.permute.xlu1 %1624 }
 0x700   :  { %3328 = vset.pattern.permute.xlu0 %v3461_v9 }
 0x701   :  { %3118 = vmatpush3.bf16.msra.mxu0 %v1431_v23  ;;  %1815 = vperm.xlu0 %3328, %v1741_v5  }
 0x702   :  { %3119 = vmatprep.subr.bf16.mxu0 %v1432_v28 }
 0x703   :  { %1811 = vperm.xlu1 %3325, %v1740_v62   ;;  %v1633_v12 = vpop.permute.xlu1 %1632 }
 0x705   :  { %3120 = vmatpush3.bf16.msra.mxu0 %v1432_v28  ;;  %3330 = vset.pattern.permute.xlu0 %v3460_v3 }
 0x706   :  { %3121 = vmatprep.subr.bf16.mxu0 %v1433_v34  ;;  %1774 = vperm.xlu0 %3330, %v1743_v14  }
 0x707   :  { %3327 = vset.pattern.permute.xlu1 %v3460_v3 }
 0x708   :  { %1764 = vperm.xlu1 %3327, %v1741_v5  }
 0x709   :  { %3122 = vmatpush3.bf16.msra.mxu0 %v1433_v34 }
 0x70a   :  { %3123 = vmatprep.subr.bf16.mxu0 %v1434_v41  ;;  %3332 = vset.pattern.permute.xlu0 %v3461_v9 }
 0x70b   :  { %1827 = vperm.xlu0 %3332, %v1744_v15  }
 0x70c   :  { %1769 = vperm.xlu1 %3327, %v1742_v13  }
 0x70d   :  { %3124 = vmatpush3.bf16.msra.mxu0 %v1434_v41  ;;  %v1621_v41 = vpop.permute.xlu0 %1620 }
 0x70e   :  { %3125 = vmatprep.subr.bf16.mxu0 %v1435_v43 }
 0x70f   :  { %3334 = vset.pattern.permute.xlu0 %v3462_v27 }
 0x710   :  { %2029 = vperm.xlu0 %3334, %v1738_v57   ;;  %3329 = vset.pattern.permute.xlu1 %v3461_v9 }
 0x711   :  { %3126 = vmatpush3.bf16.msra.mxu0 %v1435_v43  ;;  %1819 = vperm.xlu1 %3329, %v1742_v13   ;;  %v1629_v57 = vpop.permute.xlu0 %1628 }
 0x712   :  { %3127 = vmatprep.subr.bf16.mxu0 %v1436_v46 }
 0x714   :  { %2041 = vperm.xlu0 %3334, %v1741_v5  }
 0x715   :  { %3128 = vmatpush3.bf16.msra.mxu0 %v1436_v46  ;;  %1823 = vperm.xlu1 %3329, %v1743_v14   ;;  %v1637_v11 = vpop.permute.xlu0 %1636 }
 0x718   :  { %3130 = vmatmul.mubr.bf16.vlgmr.msra.gmra.mrb[48].mxu0 %v3374_v48  ;;  %2049 = vperm.xlu0 %3334, %v1743_v14  }
 0x719   :  { %3133 = vmatprep.mubr.bf16.mxu0 %v3375_v49  ;;  %3331 = vset.pattern.permute.xlu1 %v3460_v3 }
 0x71a   :  { %1779 = vperm.xlu1 %3331, %v1744_v15  }
 0x71c   :  { %2057 = vperm.xlu0 %3334, %v1745_v29  }
 0x71e   :  { %1784 = vperm.xlu1 %3331, %v1745_v29  }
 0x720   :  { %3134 = vmatmul.mubr.bf16.gmra.mrb[52].mxu0 %v3376_v50  ;;  %3337 = vset.pattern.permute.xlu0 %v3461_v9 }
 0x721   :  { %3137 = vmatprep.mubr.bf16.mxu0 %v3377_v51 }
 0x722   :  { %3333 = vset.pattern.permute.xlu1 %v3461_v9 }
 0x723   :  { %1831 = vperm.xlu1 %3333, %v1745_v29  }
 0x727   :  { %3335 = vset.pattern.permute.xlu1 %v3462_v27 }
 0x728   :  { %3138 = vmatmul.mubr.bf16.gmra.mrb[56].mxu0 %v3378_v52  ;;  %2033 = vperm.xlu1 %3335, %v1739_v59  }
 0x729   :  { %3141 = vmatprep.mubr.bf16.mxu0 %v3379_v54 }
 0x72c   :  { %2037 = vperm.xlu1 %3335, %v1740_v62  }
 0x730   :  { %3142 = vmatmul.mubr.bf16.gmra.mrb[60].mxu0 %v3380_v55  ;;  %2045 = vperm.xlu1 %3335, %v1742_v13  }
 0x734   :  { %2053 = vperm.xlu1 %3335, %v1744_v15  }
 0x738   :  { %3336 = vset.pattern.permute.xlu1 %v3460_v3 }
 0x7eb   :  { %v3131_v18 = vpop.f32.mrb[48].mxu0 }
 0x7ec   :  { %v1536_v19 = vpop.f32.mrb[49].mxu0 }
 0x7ed   :  { %v3132_v20 = vpop.f32.mrb[50].mxu0 }
 0x7ee   :  { %v1600_v21 = vpack.c.bf16 %v3132_v20, %v3131_v18  ;;  %v1539_v22 = vpop.f32.mrb[51].mxu0  ;;  %v2751_v20 = vld [vmem:[%s4173_s3 + $0x8] sm:$0xf] }
 0x7ef   :  { %v1599_v23 = vpack.c.bf16 %v1539_v22, %v1536_v19  ;;  %v1750_v22 = vpop.permute.xlu1 %1749 }
 0x7f0   :  { %v1640_v26 = vadd.bf16 %v1613_v25, %v1600_v21  ;;  %v3381_v21 = vld [vmem:[%s4172_s2 + $0x40] sm:$0xff]  }
 0x7f1   :  { %v1639_v28 = vadd.bf16 %v1609_v24, %v1599_v23  ;;  %3181 = vmatprep.mubr.bf16.mxu0 %v3381_v21  ;;  %v1706_v23 = vstv %s2752_s4 }
 0x7f2   :  { %v1648_v35 = vmul.bf16 1009007652, %v1640_v26 }
 0x7f3   :  { %v1647_v31 = vmul.bf16 1009007652, %v1639_v28  ;;  %v3135_v33 = vpop.f32.mrb[52].mxu0 }
 0x7f4   :  { %v1552_v34 = vpop.f32.mrb[53].mxu0  ;;  %v1656_v43 = vmax.bf16 %v1648_v35, %v1640_v26 }
 0x7f5   :  { %v1655_v36 = vmax.bf16 %v1647_v31, %v1639_v28  ;;  %v3136_v37 = vpop.f32.mrb[54].mxu0 }
 0x7f6   :  { %v1602_v38 = vpack.c.bf16 %v3136_v37, %v3135_v33  ;;  %v1555_v39 = vpop.f32.mrb[55].mxu0  ;;  %v1755_v33 = vpop.permute.xlu1 %1754 }
 0x7f7   :  { %v1601_v40 = vpack.c.bf16 %v1555_v39, %v1552_v34  ;;  %3146 = vmatpush3.bf16.msra.mxu1 %v1655_v36 }
 0x7f8   :  { %3147 = vmatprep.subr.bf16.mxu1 %v3463_v30  ;;  %v1642_v46 = vadd.bf16 %v1621_v41, %v1602_v38  ;;  %v1710_v38 = vstv %s2753_s27 }
 0x7f9   :  { %v1641_v48 = vadd.bf16 %v1617_v42, %v1601_v40 }
 0x7fa   :  { %v1650_v52 = vmul.bf16 1009007652, %v1642_v46  ;;  %v1808_v34 = vpop.permute.xlu1 %1807 }
 0x7fb   :  { %v1649_v49 = vmul.bf16 1009007652, %v1641_v48  ;;  %v3139_v50 = vpop.f32.mrb[56].mxu0  ;;  %3148 = vmatpush3.bf16.msra.mxu1 %v1656_v43 }
 0x7fc   :  { %v1568_v51 = vpop.f32.mrb[57].mxu0  ;;  %3149 = vmatprep.subr.bf16.mxu1 %v3463_v30  ;;  %v1658_v59 = vmax.bf16 %v1650_v52, %v1642_v46 }
 0x7fd   :  { %v1657_v54 = vmax.bf16 %v1649_v49, %v1641_v48  ;;  %v3140_v55 = vpop.f32.mrb[58].mxu0 }
 0x7fe   :  { %v1604_v56 = vpack.c.bf16 %v3140_v55, %v3139_v50  ;;  %v1571_v0 = vpop.f32.mrb[59].mxu0  ;;  %v1812_v40 = vpop.permute.xlu1 %1811 }
 0x7ff   :  { %v1603_v53 = vpack.c.bf16 %v1571_v0, %v1568_v51  ;;  %3150 = vmatpush3.bf16.msra.mxu1 %v1657_v54  ;;  %v1804_v51 = vpop.permute.xlu0 %1803 }
 0x800   :  { %3151 = vmatprep.subr.bf16.mxu1 %v3463_v30  ;;  %v1644_v60 = vadd.bf16 %v1629_v57, %v1604_v56 }
 0x801   :  { %v1643_v61 = vadd.bf16 %v1625_v58, %v1603_v53 }
 0x802   :  { %v1652_v5 = vmul.bf16 1009007652, %v1644_v60  ;;  %v1765_v42 = vpop.permute.xlu1 %1764 }
 0x803   :  { %v1651_v62 = vmul.bf16 1009007652, %v1643_v61  ;;  %v3143_v63 = vpop.f32.mrb[60].mxu0  ;;  %3152 = vmatpush3.bf16.msra.mxu1 %v1658_v59  ;;  %v1760_v54 = vpop.permute.xlu0 %1759 }
 0x804   :  { %v1584_v4 = vpop.f32.mrb[61].mxu0  ;;  %3153 = vmatprep.subr.bf16.mxu1 %v3463_v30  ;;  %v1660_v13 = vmax.bf16 %v1652_v5, %v1644_v60 }
 0x805   :  { %v1659_v6 = vmax.bf16 %v1651_v62, %v1643_v61  ;;  %v3144_v7 = vpop.f32.mrb[62].mxu0 }
 0x806   :  { %v1606_v14 = vpack.c.bf16 %v3144_v7, %v3143_v63  ;;  %v1587_v8 = vpop.f32.mrb[63].mxu0  ;;  %v1770_v49 = vpop.permute.xlu1 %1769 }
 0x807   :  { %v1605_v10 = vpack.c.bf16 %v1587_v8, %v1584_v4  ;;  %3154 = vmatpush3.bf16.msra.mxu1 %v1659_v6  ;;  %v1816_v62 = vpop.permute.xlu0 %1815 }
 0x808   :  { %3155 = vmatprep.subr.bf16.mxu1 %v3463_v30  ;;  %v1646_v15 = vadd.bf16 %v1637_v11, %v1606_v14 }
 0x809   :  { %v1645_v16 = vadd.bf16 %v1633_v12, %v1605_v10 }
 0x80a   :  { %v1654_v29 = vmul.bf16 1009007652, %v1646_v15  ;;  %v1820_v45 = vpop.permute.xlu1 %1819 }
 0x80b   :  { %v1653_v17 = vmul.bf16 1009007652, %v1645_v16  ;;  %3156 = vmatpush3.bf16.msra.mxu1 %v1660_v13  ;;  %v1775_v8 = vpop.permute.xlu0 %1774 }
 0x80c   :  { %3157 = vmatprep.subr.bf16.mxu1 %v3463_v30  ;;  %v1662_v19 = vmax.bf16 %v1654_v29, %v1646_v15 }
 0x80d   :  { %v1661_v18 = vmax.bf16 %v1653_v17, %v1645_v16 }
 0x80e   :  { %v1824_v58 = vpop.permute.xlu1 %1823 }
 0x80f   :  { %3158 = vmatpush3.bf16.msra.mxu1 %v1661_v18 }
 0x810   :  { %3159 = vmatprep.subr.bf16.mxu1 %v3463_v30 }
 0x812   :  { %v1780_v14 = vpop.permute.xlu1 %1779 }
 0x813   :  { %3160 = vmatpush3.bf16.msra.mxu1 %v1662_v19  ;;  %v1828_v19 = vpop.permute.xlu0 %1827 }
 0x814   :  { %3197 = vmatprep.subr.bf16.mxu1 %v3463_v30 }
 0x816   :  { %3162 = vmatmul.mubr.bf16.vlgmr.msra.gmra.mrb[12].mxu1 %v2751_v20  ;;  %v1785_v15 = vpop.permute.xlu1 %1784 }
 0x817   :  { %3213 = vmatprep.mubr.msk.bf16.mxu1 %vm3464_vm0, %v3463_v30 }
 0x8e9   :  { %v1699_v24 = vpop.f32.mrb[12].mxu1 }
 0x8ea   :  { %v1707_v25 = vadd.f32 %v1706_v23, %v1699_v24  ;;  %v3163_v26 = vpop.f32.mrb[13].mxu1  ;;  %v1711_v41 = vadd.f32 %v1710_v38, %v1699_v24  ;;  %v1832_v24 = vpop.permute.xlu1 %1831  ;;  %v3384_v38 = vld [vmem:[%s4172_s2 + $0x58] sm:$0xff]  }
 0x8eb   :  { %v1702_v28 = vpop.f32.mrb[14].mxu1 }
 0x8ec   :  { %3409 = vtanh.f32 %v1707_v25  ;;  %v3164_v31 = vpop.f32.mrb[15].mxu1  ;;  %v1713_v43 = vrot.slane %v1711_v41, 1  ;;  %v3387_v41 = vld [vmem:[%s4172_s2 + $0x70] sm:$0xff]  }
 0x8ee   :  { %v1715_v46 = vsub.f32 %v3786_v1, %v1713_v43  ;;  %v2142_v43 = vld [vmem:[%s4171_s1] sm:$0xff] }
 0x8f6   :  { %v3410_v35 = vpop.eup %3409 }
 0x8f7   :  { %v1716_v36 = vsub.f32 0.0, %v3410_v35  ;;  %v4006_v37 = vsub.f32 %v1299_v47, %v3410_v35  ;;  %v3382_v35 = vld [vmem:[%s4172_s2 + $0x48] sm:$0xff]  }
 0x8f9   :  { %v1717_v39 = vmul.f32 1.442695, %v1716_v36  ;;  %v3383_v36 = vld [vmem:[%s4172_s2 + $0x50] sm:$0xff]  }
 0x8fb   :  { %3411 = vpow2.f32 %v1717_v39  ;;  %v3385_v39 = vld [vmem:[%s4172_s2 + $0x60] sm:$0xff]  }
 0x905   :  { %v3412_v48 = vpop.eup %3411 }
 0x906   :  { %v4009_v50 = vmul.f32 %v3412_v48, %v1715_v46  ;;  %v2143_v46 = vld [vmem:[%s4171_s1 + $0x8] sm:$0xff]  ;;  %v2144_v48 = vld [vmem:[%s4171_s1 + $0x10] sm:$0xff] }
 0x908   :  { %v1746_v52 = vpack.c.bf16 %v4009_v50, %v4009_v50 }
 0x90a   :  { %v1788_v44 = vpack.i.b16 %v1746_v52, %v1746_v52 }
 0x90c   :  { %v1793_v47 = vrot.slane %v1788_v44, %v3566_v32  ;;  %v2146_v44 = vld [vmem:[%s4171_s1 + $0x20] sm:$0xff] }
 0x90e   :  { %v1795_v55 = vmul.bf16 %v1793_v47, %v1755_v33  ;;  %v1794_v56 = vmul.bf16 %v1793_v47, %v1750_v22  ;;  %v1796_v0 = vmul.bf16 %v1793_v47, %v1760_v54  ;;  %v1797_v59 = vmul.bf16 %v1793_v47, %v1765_v42  ;;  %v3388_v42 = vld [vmem:[%s4172_s2 + $0x78] sm:$0xff]   ;;  %v2148_v54 = vld [vmem:[%s4171_s1 + $0x30] sm:$0xff] }
 0x90f   :  { %v1798_v5 = vmul.bf16 %v1793_v47, %v1770_v49  ;;  %v1799_v12 = vmul.bf16 %v1793_v47, %v1775_v8  ;;  %v1800_v17 = vmul.bf16 %v1793_v47, %v1780_v14  ;;  %v1801_v21 = vmul.bf16 %v1793_v47, %v1785_v15 }
 0x910   :  { %v1835_v53 = vadd.bf16 %v1808_v34, %v1795_v55  ;;  %v1834_v57 = vadd.bf16 %v1804_v51, %v1794_v56  ;;  %v1836_v61 = vadd.bf16 %v1812_v40, %v1796_v0  ;;  %v1837_v7 = vadd.bf16 %v1816_v62, %v1797_v59  ;;  %v3386_v40 = vld [vmem:[%s4172_s2 + $0x68] sm:$0xff]   ;;  %v2145_v51 = vld [vmem:[%s4171_s1 + $0x18] sm:$0xff]  ;;  %v2152_v0 = vld [vmem:[%s4171_s1 + $0x50] sm:$0xff] }
 0x911   :  { %v1838_v10 = vadd.bf16 %v1820_v45, %v1798_v5  ;;  %v1839_v18 = vadd.bf16 %v1824_v58, %v1799_v12  ;;  %v1840_v23 = vadd.bf16 %v1828_v19, %v1800_v17  ;;  %v1841_v25 = vadd.bf16 %v1832_v24, %v1801_v21  ;;  %v2147_v45 = vld [vmem:[%s4171_s1 + $0x28] sm:$0xff]  ;;  %v2149_v55 = vld [vmem:[%s4171_s1 + $0x38] sm:$0xff]  ;;  %v2150_v58 = vld [vmem:[%s4171_s1 + $0x40] sm:$0xff]  ;;  %v2034_v12 = vpop.permute.xlu1 %2033 }
 0x912   :  { %v1843_v1 = vmul.bf16 1009007652, %v1835_v53  ;;  %v1842_v60 = vmul.bf16 1009007652, %v1834_v57  ;;  %v1844_v6 = vmul.bf16 1009007652, %v1836_v61  ;;  %v2158_v49 = vpack.c.bf16 %v2143_v46, %v2142_v43 }
 0x913   :  { %v1845_v11 = vmul.bf16 1009007652, %v1837_v7  ;;  %v1846_v16 = vmul.bf16 1009007652, %v1838_v10  ;;  %v1847_v22 = vmul.bf16 1009007652, %v1839_v18  ;;  %v2159_v52 = vpack.c.bf16 %v2145_v51, %v2144_v48 }
 0x914   :  { %v1850_v63 = vmax.bf16 %v1842_v60, %v1834_v57  ;;  %v1851_v4 = vmax.bf16 %v1843_v1, %v1835_v53  ;;  %v1852_v13 = vmax.bf16 %v1844_v6, %v1836_v61  ;;  %v1848_v26 = vmul.bf16 1009007652, %v1840_v23  ;;  %2169 = vperm.xlu1 %3336, %v2158_v49   ;;  %2223 = vperm.xlu0 %3337, %v2158_v49   ;;  %v2153_v53 = vld [vmem:[%s4171_s1 + $0x58] sm:$0xff]  ;;  %v2151_v1 = vld [vmem:[%s4171_s1 + $0x48] sm:$0xff]  ;;  %v2154_v59 = vld [vmem:[%s4171_s1 + $0x60] sm:$0xff] }
 0x915   :  { %v1853_v29 = vmax.bf16 %v1845_v11, %v1837_v7  ;;  %v1854_v20 = vmax.bf16 %v1846_v16, %v1838_v10  ;;  %v1855_v28 = vmax.bf16 %v1847_v22, %v1839_v18  ;;  %v1849_v31 = vmul.bf16 1009007652, %v1841_v25  ;;  %v2155_v60 = vld [vmem:[%s4171_s1 + $0x68] sm:$0xff] }
 0x916   :  { %3165 = vmatprep.subr.bf16.mxu0 %v1850_v63  ;;  %v1856_v33 = vmax.bf16 %v1848_v26, %v1840_v23  ;;  %v2160_v47 = vpack.c.bf16 %v2147_v45, %v2146_v44  ;;  %v2161_v56 = vpack.c.bf16 %v2149_v55, %v2148_v54  ;;  %v2163_v57 = vpack.c.bf16 %v2153_v53, %v2152_v0  ;;  %v2038_v23 = vpop.permute.xlu1 %2037 }
 0x917   :  { %3166 = vmatpush3.bf16.msra.mxu0 %v1850_v63  ;;  %v1857_v34 = vmax.bf16 %v1849_v31, %v1841_v25  ;;  %v2162_v61 = vpack.c.bf16 %v2151_v1, %v2150_v58  ;;  %v2164_v62 = vpack.c.bf16 %v2155_v60, %v2154_v59  ;;  %v2156_v63 = vld [vmem:[%s4171_s1 + $0x70] sm:$0xff] }
 0x918   :  { %3167 = vmatprep.subr.bf16.mxu0 %v1851_v4  ;;  %2174 = vperm.xlu1 %3336, %v2159_v52  }
 0x919   :  { %3339 = vset.pattern.permute.xlu0 %v3460_v3 }
 0x91a   :  { %2179 = vperm.xlu0 %3339, %v2160_v47  }
 0x91b   :  { %3168 = vmatpush3.bf16.msra.mxu0 %v1851_v4  ;;  %v2157_v4 = vld [vmem:[%s4171_s1 + $0x78] sm:$0xff] }
 0x91c   :  { %3169 = vmatprep.subr.bf16.mxu0 %v1852_v13  ;;  %3338 = vset.pattern.permute.xlu1 %v3461_v9  ;;  %v2165_v5 = vpack.c.bf16 %v2157_v4, %v2156_v63  ;;  %v2794_v63 = vld [vmem:[%s4173_s3 + $0x4] sm:$0xf] }
 0x91d   :  { %2227 = vperm.xlu1 %3338, %v2159_v52   ;;  %v3389_v4 = vld [vmem:[%s4172_s2] sm:$0xff]  }
 0x91e   :  { %3341 = vset.pattern.permute.xlu0 %v3461_v9 }
 0x91f   :  { %3170 = vmatpush3.bf16.msra.mxu0 %v1852_v13  ;;  %2235 = vperm.xlu0 %3341, %v2161_v56  }
 0x920   :  { %3171 = vmatprep.subr.bf16.mxu0 %v1853_v29 }
 0x921   :  { %2231 = vperm.xlu1 %3338, %v2160_v47  }
 0x923   :  { %3172 = vmatpush3.bf16.msra.mxu0 %v1853_v29  ;;  %3343 = vset.pattern.permute.xlu0 %v3460_v3 }
 0x924   :  { %3173 = vmatprep.subr.bf16.mxu0 %v1854_v20  ;;  %2194 = vperm.xlu0 %3343, %v2163_v57  }
 0x925   :  { %3340 = vset.pattern.permute.xlu1 %v3460_v3 }
 0x926   :  { %2184 = vperm.xlu1 %3340, %v2161_v56  }
 0x927   :  { %3174 = vmatpush3.bf16.msra.mxu0 %v1854_v20 }
 0x928   :  { %3175 = vmatprep.subr.bf16.mxu0 %v1855_v28  ;;  %3345 = vset.pattern.permute.xlu0 %v3461_v9 }
 0x929   :  { %2247 = vperm.xlu0 %3345, %v2164_v62  }
 0x92a   :  { %2189 = vperm.xlu1 %3340, %v2162_v61  }
 0x92b   :  { %3176 = vmatpush3.bf16.msra.mxu0 %v1855_v28 }
 0x92c   :  { %3177 = vmatprep.subr.bf16.mxu0 %v1856_v33 }
 0x92d   :  { %3347 = vset.pattern.permute.xlu0 %v3462_v27 }
 0x92e   :  { %2448 = vperm.xlu0 %3347, %v2158_v49   ;;  %3342 = vset.pattern.permute.xlu1 %v3461_v9 }
 0x92f   :  { %3178 = vmatpush3.bf16.msra.mxu0 %v1856_v33  ;;  %2239 = vperm.xlu1 %3342, %v2162_v61  }
 0x930   :  { %3179 = vmatprep.subr.bf16.mxu0 %v1857_v34 }
 0x932   :  { %2460 = vperm.xlu0 %3347, %v2161_v56  }
 0x933   :  { %3180 = vmatpush3.bf16.msra.mxu0 %v1857_v34  ;;  %2243 = vperm.xlu1 %3342, %v2163_v57  }
 0x936   :  { %3182 = vmatmul.mubr.bf16.vlgmr.msra.gmra.mrb[64].mxu0 %v3382_v35  ;;  %2468 = vperm.xlu0 %3347, %v2163_v57  }
 0x937   :  { %3185 = vmatprep.mubr.bf16.mxu0 %v3383_v36  ;;  %3344 = vset.pattern.permute.xlu1 %v3460_v3  ;;  %v2030_v3 = vpop.permute.xlu0 %2029 }
 0x938   :  { %2199 = vperm.xlu1 %3344, %v2164_v62  }
 0x93a   :  { %2476 = vperm.xlu0 %3347, %v2165_v5  }
 0x93b   :  { %v2042_v22 = vpop.permute.xlu0 %2041 }
 0x93c   :  { %2204 = vperm.xlu1 %3344, %v2165_v5  }
 0x93e   :  { %3186 = vmatmul.mubr.bf16.gmra.mrb[68].mxu0 %v3384_v38 }
 0x93f   :  { %3189 = vmatprep.mubr.bf16.mxu0 %v3385_v39 }
 0x940   :  { %3346 = vset.pattern.permute.xlu1 %v3461_v9 }
 0x941   :  { %2251 = vperm.xlu1 %3346, %v2165_v5  }
 0x945   :  { %3348 = vset.pattern.permute.xlu1 %v3462_v27 }
 0x946   :  { %3190 = vmatmul.mubr.bf16.gmra.mrb[72].mxu0 %v3386_v40  ;;  %2452 = vperm.xlu1 %3348, %v2159_v52  }
 0x947   :  { %3193 = vmatprep.mubr.bf16.mxu0 %v3387_v41  ;;  %v2050_v41 = vpop.permute.xlu0 %2049 }
 0x94a   :  { %2456 = vperm.xlu1 %3348, %v2160_v47  }
 0x94b   :  { %v2058_v0 = vpop.permute.xlu0 %2057 }
 0x94e   :  { %3194 = vmatmul.mubr.bf16.gmra.mrb[76].mxu0 %v3388_v42  ;;  %2464 = vperm.xlu1 %3348, %v2162_v61   ;;  %v2046_v42 = vpop.permute.xlu1 %2045 }
 0x94f   :  { %3233 = vmatprep.mubr.bf16.mxu0 %v3389_v4 }
 0x952   :  { %2472 = vperm.xlu1 %3348, %v2164_v62   ;;  %v2054_v53 = vpop.permute.xlu1 %2053 }
 0x993   :  { %v2170_v5 = vpop.permute.xlu1 %2169 }
 0xa09   :  { %v3183_v6 = vpop.f32.mrb[64].mxu0 }
 0xa0a   :  { %v1957_v7 = vpop.f32.mrb[65].mxu0 }
 0xa0b   :  { %v3184_v14 = vpop.f32.mrb[66].mxu0 }
 0xa0c   :  { %v2021_v8 = vpack.c.bf16 %v3184_v14, %v3183_v6  ;;  %v1960_v10 = vpop.f32.mrb[67].mxu0  ;;  %v2127_v6 = vstv %s2795_s24 }
 0xa0d   :  { %v2020_v11 = vpack.c.bf16 %v1960_v10, %v1957_v7 }
 0xa0e   :  { %v2061_v13 = vadd.bf16 %v2034_v12, %v2021_v8 }
 0xa0f   :  { %v2060_v15 = vadd.bf16 %v2030_v3, %v2020_v11  ;;  %v2175_v3 = vpop.permute.xlu1 %2174 }
 0xa10   :  { %v2069_v29 = vmul.bf16 1009007652, %v2061_v13 }
 0xa11   :  { %v2068_v16 = vmul.bf16 1009007652, %v2060_v15  ;;  %v3187_v17 = vpop.f32.mrb[68].mxu0 }
 0xa12   :  { %v1973_v9 = vpop.f32.mrb[69].mxu0  ;;  %v2077_v24 = vmax.bf16 %v2069_v29, %v2061_v13 }
 0xa13   :  { %v2076_v18 = vmax.bf16 %v2068_v16, %v2060_v15  ;;  %v3188_v27 = vpop.f32.mrb[70].mxu0  ;;  %v2228_v12 = vpop.permute.xlu1 %2227 }
 0xa14   :  { %v2023_v19 = vpack.c.bf16 %v3188_v27, %v3187_v17  ;;  %v1976_v20 = vpop.f32.mrb[71].mxu0  ;;  %v2131_v17 = vstv %s2796_s25 }
 0xa15   :  { %v2022_v21 = vpack.c.bf16 %v1976_v20, %v1973_v9  ;;  %3198 = vmatpush3.bf16.msra.mxu1 %v2076_v18 }
 0xa16   :  { %3199 = vmatprep.subr.bf16.mxu1 %v3463_v30  ;;  %v2063_v25 = vadd.bf16 %v2042_v22, %v2023_v19 }
 0xa17   :  { %v2062_v26 = vadd.bf16 %v2038_v23, %v2022_v21  ;;  %v2232_v29 = vpop.permute.xlu1 %2231 }
 0xa18   :  { %v2071_v34 = vmul.bf16 1009007652, %v2063_v25 }
 0xa19   :  { %v2070_v28 = vmul.bf16 1009007652, %v2062_v26  ;;  %v3191_v31 = vpop.f32.mrb[72].mxu0  ;;  %3200 = vmatpush3.bf16.msra.mxu1 %v2077_v24  ;;  %v2224_v24 = vpop.permute.xlu0 %2223 }
 0xa1a   :  { %v1989_v33 = vpop.f32.mrb[73].mxu0  ;;  %3201 = vmatprep.subr.bf16.mxu1 %v3463_v30  ;;  %v2079_v43 = vmax.bf16 %v2071_v34, %v2063_v25 }
 0xa1b   :  { %v2078_v35 = vmax.bf16 %v2070_v28, %v2062_v26  ;;  %v3192_v36 = vpop.f32.mrb[74].mxu0  ;;  %v2185_v27 = vpop.permute.xlu1 %2184 }
 0xa1c   :  { %v2025_v38 = vpack.c.bf16 %v3192_v36, %v3191_v31  ;;  %v1992_v39 = vpop.f32.mrb[75].mxu0 }
 0xa1d   :  { %v2024_v40 = vpack.c.bf16 %v1992_v39, %v1989_v33  ;;  %3202 = vmatpush3.bf16.msra.mxu1 %v2078_v35  ;;  %v2180_v33 = vpop.permute.xlu0 %2179 }
 0xa1e   :  { %3203 = vmatprep.subr.bf16.mxu1 %v3463_v30  ;;  %v2065_v46 = vadd.bf16 %v2050_v41, %v2025_v38 }
 0xa1f   :  { %v2064_v48 = vadd.bf16 %v2046_v42, %v2024_v40  ;;  %v2190_v22 = vpop.permute.xlu1 %2189 }
 0xa20   :  { %v2073_v44 = vmul.bf16 1009007652, %v2065_v46 }
 0xa21   :  { %v2072_v49 = vmul.bf16 1009007652, %v2064_v48  ;;  %v3195_v51 = vpop.f32.mrb[76].mxu0  ;;  %3204 = vmatpush3.bf16.msra.mxu1 %v2079_v43 }
 0xa22   :  { %v2005_v52 = vpop.f32.mrb[77].mxu0  ;;  %3205 = vmatprep.subr.bf16.mxu1 %v3463_v30  ;;  %v2081_v57 = vmax.bf16 %v2073_v44, %v2065_v46  ;;  %v2236_v46 = vpop.permute.xlu0 %2235 }
 0xa23   :  { %v2080_v45 = vmax.bf16 %v2072_v49, %v2064_v48  ;;  %v3196_v47 = vpop.f32.mrb[78].mxu0  ;;  %v2240_v28 = vpop.permute.xlu1 %2239 }
 0xa24   :  { %v2027_v54 = vpack.c.bf16 %v3196_v47, %v3195_v51  ;;  %v2008_v55 = vpop.f32.mrb[79].mxu0 }
 0xa25   :  { %v2026_v56 = vpack.c.bf16 %v2008_v55, %v2005_v52  ;;  %3206 = vmatpush3.bf16.msra.mxu1 %v2080_v45 }
 0xa26   :  { %3207 = vmatprep.subr.bf16.mxu1 %v3463_v30  ;;  %v2067_v58 = vadd.bf16 %v2058_v0, %v2027_v54 }
 0xa27   :  { %v2066_v1 = vadd.bf16 %v2054_v53, %v2026_v56  ;;  %v2244_v40 = vpop.permute.xlu1 %2243 }
 0xa28   :  { %v2075_v60 = vmul.bf16 1009007652, %v2067_v58 }
 0xa29   :  { %v2074_v59 = vmul.bf16 1009007652, %v2066_v1  ;;  %3208 = vmatpush3.bf16.msra.mxu1 %v2081_v57 }
 0xa2a   :  { %3209 = vmatprep.subr.bf16.mxu1 %v3463_v30  ;;  %v2083_v62 = vmax.bf16 %v2075_v60, %v2067_v58 }
 0xa2b   :  { %v2082_v61 = vmax.bf16 %v2074_v59, %v2066_v1  ;;  %v2200_v45 = vpop.permute.xlu1 %2199 }
 0xa2d   :  { %3210 = vmatpush3.bf16.msra.mxu1 %v2082_v61 }
 0xa2e   :  { %3211 = vmatprep.subr.bf16.mxu1 %v3463_v30 }
 0xa2f   :  { %v2205_v0 = vpop.permute.xlu1 %2204 }
 0xa31   :  { %3212 = vmatpush3.bf16.msra.mxu1 %v2083_v62 }
 0xa32   :  { %3249 = vmatprep.subr.bf16.mxu1 %v3463_v30 }
 0xa33   :  { %v2252_v4 = vpop.permute.xlu1 %2251 }
 0xa34   :  { %3214 = vmatmul.mubr.bf16.vlgmr.msra.gmra.mrb[16].mxu1 %v2794_v63 }
 0xa35   :  { %3265 = vmatprep.mubr.msk.bf16.mxu1 %vm3464_vm0, %v3463_v30 }
 0xb07   :  { %v2120_v7 = vpop.f32.mrb[16].mxu1 }
 0xb08   :  { %v2128_v14 = vadd.f32 %v2127_v6, %v2120_v7  ;;  %v3215_v8 = vpop.f32.mrb[17].mxu1  ;;  %v2132_v18 = vadd.f32 %v2131_v17, %v2120_v7  ;;  %v3394_v17 = vld [vmem:[%s4172_s2 + $0x28] sm:$0xff]  }
 0xb09   :  { %v2123_v10 = vpop.f32.mrb[18].mxu1 }
 0xb0a   :  { %3413 = vtanh.f32 %v2128_v14  ;;  %v3216_v11 = vpop.f32.mrb[19].mxu1  ;;  %v2134_v19 = vrot.slane %v2132_v18, 1 }
 0xb0b   :  { %v3390_v11 = vld [vmem:[%s4172_s2 + $0x8] sm:$0xff]  }
 0xb0c   :  { %v2136_v20 = vsub.f32 %v3900_v2, %v2134_v19 }
 0xb14   :  { %v4110_v13 = vpop.eup %3413 }
 0xb15   :  { %v2137_v15 = vsub.f32 0.0, %v4110_v13  ;;  %v2141_v16 = vsub.f32 %v4006_v37, %v4110_v13 }
 0xb17   :  { %v2138_v9 = vmul.f32 1.442695, %v2137_v15  ;;  %v3393_v15 = vld [vmem:[%s4172_s2 + $0x20] sm:$0xff]  }
 0xb19   :  { %3415 = vpow2.f32 %v2138_v9  ;;  %v3395_v9 = vld [vmem:[%s4172_s2 + $0x30] sm:$0xff]  }
 0xb23   :  { %v3416_v21 = vpop.eup %3415 }
 0xb24   :  { %v4116_v23 = vmul.f32 %v3416_v21, %v2136_v20 }
 0xb26   :  { %v2166_v25 = vpack.c.bf16 %v4116_v23, %v4116_v23 }
 0xb28   :  { %v2208_v26 = vpack.i.b16 %v2166_v25, %v2166_v25  ;;  %v2453_v25 = vpop.permute.xlu1 %2452 }
 0xb2a   :  { %v2213_v31 = vrot.slane %v2208_v26, %v3566_v32  ;;  %v2195_v32 = vpop.permute.xlu0 %2194 }
 0xb2c   :  { %v2215_v34 = vmul.bf16 %v2213_v31, %v2175_v3  ;;  %v2214_v35 = vmul.bf16 %v2213_v31, %v2170_v5  ;;  %v2216_v36 = vmul.bf16 %v2213_v31, %v2180_v33  ;;  %v2217_v41 = vmul.bf16 %v2213_v31, %v2185_v27  ;;  %v3391_v3 = vld [vmem:[%s4172_s2 + $0x10] sm:$0xff]  }
 0xb2d   :  { %v2218_v51 = vmul.bf16 %v2213_v31, %v2190_v22  ;;  %v2219_v55 = vmul.bf16 %v2213_v31, %v2195_v32  ;;  %v2220_v57 = vmul.bf16 %v2213_v31, %v2200_v45  ;;  %v2221_v61 = vmul.bf16 %v2213_v31, %v2205_v0 }
 0xb2e   :  { %v2255_v38 = vadd.bf16 %v2228_v12, %v2215_v34  ;;  %v2254_v39 = vadd.bf16 %v2224_v24, %v2214_v35  ;;  %v2256_v43 = vadd.bf16 %v2232_v29, %v2216_v36  ;;  %v2257_v44 = vadd.bf16 %v2236_v46, %v2217_v41  ;;  %v2248_v59 = vpop.permute.xlu0 %2247  ;;  %v3392_v12 = vld [vmem:[%s4172_s2 + $0x18] sm:$0xff]  }
 0xb2f   :  { %v2258_v47 = vadd.bf16 %v2240_v28, %v2218_v51  ;;  %v2259_v1 = vadd.bf16 %v2244_v40, %v2219_v55  ;;  %v2260_v63 = vadd.bf16 %v2248_v59, %v2220_v57  ;;  %v2261_v5 = vadd.bf16 %v2252_v4, %v2221_v61  ;;  %v3396_v29 = vld [vmem:[%s4172_s2 + $0x38] sm:$0xff]  }
 0xb30   :  { %v2263_v2 = vmul.bf16 1009007652, %v2255_v38  ;;  %v2262_v42 = vmul.bf16 1009007652, %v2254_v39  ;;  %v2264_v52 = vmul.bf16 1009007652, %v2256_v43 }
 0xb31   :  { %v2265_v54 = vmul.bf16 1009007652, %v2257_v44  ;;  %v2266_v53 = vmul.bf16 1009007652, %v2258_v47  ;;  %v2267_v62 = vmul.bf16 1009007652, %v2259_v1 }
 0xb32   :  { %v2270_v48 = vmax.bf16 %v2262_v42, %v2254_v39  ;;  %v2271_v49 = vmax.bf16 %v2263_v2, %v2255_v38  ;;  %v2272_v56 = vmax.bf16 %v2264_v52, %v2256_v43  ;;  %v2268_v6 = vmul.bf16 1009007652, %v2260_v63  ;;  %v2449_v24 = vpop.permute.xlu0 %2448  ;;  %v2457_v42 = vpop.permute.xlu1 %2456 }
 0xb33   :  { %v2273_v58 = vmax.bf16 %v2265_v54, %v2257_v44  ;;  %v2274_v60 = vmax.bf16 %v2266_v53, %v2258_v47  ;;  %v2275_v7 = vmax.bf16 %v2267_v62, %v2259_v1  ;;  %v2269_v14 = vmul.bf16 1009007652, %v2261_v5 }
 0xb34   :  { %3217 = vmatprep.subr.bf16.mxu0 %v2270_v48  ;;  %v2276_v8 = vmax.bf16 %v2268_v6, %v2260_v63 }
 0xb35   :  { %3218 = vmatpush3.bf16.msra.mxu0 %v2270_v48  ;;  %v2277_v10 = vmax.bf16 %v2269_v14, %v2261_v5 }
 0xb36   :  { %3219 = vmatprep.subr.bf16.mxu0 %v2271_v49  ;;  %v2461_v41 = vpop.permute.xlu0 %2460  ;;  %v2465_v0 = vpop.permute.xlu1 %2464 }
 0xb39   :  { %3220 = vmatpush3.bf16.msra.mxu0 %v2271_v49 }
 0xb3a   :  { %3221 = vmatprep.subr.bf16.mxu0 %v2272_v56  ;;  %v2473_v14 = vpop.permute.xlu1 %2472 }
 0xb3d   :  { %3222 = vmatpush3.bf16.msra.mxu0 %v2272_v56  ;;  %v2469_v56 = vpop.permute.xlu0 %2468 }
 0xb3e   :  { %3223 = vmatprep.subr.bf16.mxu0 %v2273_v58 }
 0xb41   :  { %3224 = vmatpush3.bf16.msra.mxu0 %v2273_v58 }
 0xb42   :  { %3225 = vmatprep.subr.bf16.mxu0 %v2274_v60 }
 0xb45   :  { %3226 = vmatpush3.bf16.msra.mxu0 %v2274_v60 }
 0xb46   :  { %3227 = vmatprep.subr.bf16.mxu0 %v2275_v7 }
 0xb49   :  { %3228 = vmatpush3.bf16.msra.mxu0 %v2275_v7  ;;  %v2477_v7 = vpop.permute.xlu0 %2476 }
 0xb4a   :  { %3229 = vmatprep.subr.bf16.mxu0 %v2276_v8 }
 0xb4d   :  { %3230 = vmatpush3.bf16.msra.mxu0 %v2276_v8 }
 0xb4e   :  { %3231 = vmatprep.subr.bf16.mxu0 %v2277_v10 }
 0xb51   :  { %3232 = vmatpush3.bf16.msra.mxu0 %v2277_v10 }
 0xb54   :  { %3234 = vmatmul.mubr.bf16.vlgmr.msra.gmra.mrb[80].mxu0 %v3390_v11 }
 0xb55   :  { %3237 = vmatprep.mubr.bf16.mxu0 %v3391_v3 }
 0xb5c   :  { %3238 = vmatmul.mubr.bf16.gmra.mrb[84].mxu0 %v3392_v12 }
 0xb5d   :  { %3241 = vmatprep.mubr.bf16.mxu0 %v3393_v15 }
 0xb64   :  { %3242 = vmatmul.mubr.bf16.gmra.mrb[88].mxu0 %v3394_v17 }
 0xb65   :  { %3245 = vmatprep.mubr.bf16.mxu0 %v3395_v9  ;;  %v2503_v9 = vld [vmem:[%s4173_s3] sm:$0xf]  ;;  %s3465_s3 = smov [#allocation5]  }
 0xb66   :  { %s2573_s16 = sshll.u32 %s3465_s3, 4  ;;  %s2574_s16 = int_to_ptr.vmem [resolvable:$true] %s2573_s16 }
 0xb67   :  { %s3433_s17 = scalar_lea.vmem %s2574_s16, 16  ;;  %s3437_s18 = scalar_lea.vmem %s2574_s16, 32 }
 0xb68   :  { %p3434_p5 = scmp.ne.s32.totalorder %s2574_s16, %s3433_s17  ;;  %p3438_p6 = scmp.lt.s32.totalorder %s2574_s16, %s2574_s16 }
 0xb69   :  { %p3439_p7 = scmp.lt.s32.totalorder %s3437_s18, %s3433_s17 }
 0xb6b   :  { %p3440_p8 = por %p3439_p7, %p3438_p6 }
 0xb6c   :  { %3246 = vmatmul.mubr.bf16.gmra.mrb[92].mxu0 %v3396_v29  ;;  %v2545_v29 = vstv %s2544_s14 }
 0xb6d   :  { %p3441_p9 = pnand %p3440_p8, %p3434_p5 }
 0xc27   :  { %v3235_v18 = vpop.f32.mrb[80].mxu0 }
 0xc28   :  { %v2376_v27 = vpop.f32.mrb[81].mxu0 }
 0xc29   :  { %v3236_v19 = vpop.f32.mrb[82].mxu0 }
 0xc2a   :  { %v2440_v20 = vpack.c.bf16 %v3236_v19, %v3235_v18  ;;  %v2379_v21 = vpop.f32.mrb[83].mxu0 }
 0xc2b   :  { %v2439_v22 = vpack.c.bf16 %v2379_v21, %v2376_v27 }
 0xc2c   :  { %v2480_v26 = vadd.bf16 %v2453_v25, %v2440_v20  ;;  %v2549_v25 = vstv %s2805_s15 }
 0xc2d   :  { %v2479_v28 = vadd.bf16 %v2449_v24, %v2439_v22 }
 0xc2e   :  { %v2488_v35 = vmul.bf16 1009007652, %v2480_v26 }
 0xc2f   :  { %v2487_v31 = vmul.bf16 1009007652, %v2479_v28  ;;  %v3239_v33 = vpop.f32.mrb[84].mxu0 }
 0xc30   :  { %v2392_v34 = vpop.f32.mrb[85].mxu0  ;;  %v2496_v43 = vmax.bf16 %v2488_v35, %v2480_v26 }
 0xc31   :  { %v2495_v36 = vmax.bf16 %v2487_v31, %v2479_v28  ;;  %v3240_v38 = vpop.f32.mrb[86].mxu0 }
 0xc32   :  { %v2442_v39 = vpack.c.bf16 %v3240_v38, %v3239_v33  ;;  %v2395_v40 = vpop.f32.mrb[87].mxu0  ;;  %v2561_v38 = vmul.f32 %v4116_v23, %v4116_v23 }
 0xc33   :  { %v2441_v2 = vpack.c.bf16 %v2395_v40, %v2392_v34  ;;  %3250 = vmatpush3.bf16.msra.mxu1 %v2495_v36 }
 0xc34   :  { %3251 = vmatprep.subr.bf16.mxu1 %v3463_v30  ;;  %v2482_v46 = vadd.bf16 %v2461_v41, %v2442_v39 }
 0xc35   :  { %v2481_v48 = vadd.bf16 %v2457_v42, %v2441_v2 }
 0xc36   :  { %v2490_v44 = vmul.bf16 1009007652, %v2482_v46 }
 0xc37   :  { %v2489_v49 = vmul.bf16 1009007652, %v2481_v48  ;;  %v3243_v51 = vpop.f32.mrb[88].mxu0  ;;  %3252 = vmatpush3.bf16.msra.mxu1 %v2496_v43 }
 0xc38   :  { %v2408_v52 = vpop.f32.mrb[89].mxu0  ;;  %3253 = vmatprep.subr.bf16.mxu1 %v3463_v30  ;;  %v2498_v53 = vmax.bf16 %v2490_v44, %v2482_v46 }
 0xc39   :  { %v2497_v45 = vmax.bf16 %v2489_v49, %v2481_v48  ;;  %v3244_v32 = vpop.f32.mrb[90].mxu0 }
 0xc3a   :  { %v2444_v47 = vpack.c.bf16 %v3244_v32, %v3243_v51  ;;  %v2411_v54 = vpop.f32.mrb[91].mxu0 }
 0xc3b   :  { %v2443_v55 = vpack.c.bf16 %v2411_v54, %v2408_v52  ;;  %3254 = vmatpush3.bf16.msra.mxu1 %v2497_v45 }
 0xc3c   :  { %3255 = vmatprep.subr.bf16.mxu1 %v3463_v30  ;;  %v2484_v57 = vadd.bf16 %v2469_v56, %v2444_v47 }
 0xc3d   :  { %v2483_v58 = vadd.bf16 %v2465_v0, %v2443_v55 }
 0xc3e   :  { %v2492_v61 = vmul.bf16 1009007652, %v2484_v57 }
 0xc3f   :  { %v2491_v1 = vmul.bf16 1009007652, %v2483_v58  ;;  %v3247_v59 = vpop.f32.mrb[92].mxu0  ;;  %3256 = vmatpush3.bf16.msra.mxu1 %v2498_v53 }
 0xc40   :  { %v2424_v60 = vpop.f32.mrb[93].mxu0  ;;  %3257 = vmatprep.subr.bf16.mxu1 %v3463_v30  ;;  %v2500_v8 = vmax.bf16 %v2492_v61, %v2484_v57 }
 0xc41   :  { %v2499_v62 = vmax.bf16 %v2491_v1, %v2483_v58  ;;  %v3248_v63 = vpop.f32.mrb[94].mxu0 }
 0xc42   :  { %v2446_v4 = vpack.c.bf16 %v3248_v63, %v3247_v59  ;;  %v2427_v5 = vpop.f32.mrb[95].mxu0 }
 0xc43   :  { %v2445_v6 = vpack.c.bf16 %v2427_v5, %v2424_v60  ;;  %3258 = vmatpush3.bf16.msra.mxu1 %v2499_v62 }
 0xc44   :  { %3259 = vmatprep.subr.bf16.mxu1 %v3463_v30  ;;  %v2486_v10 = vadd.bf16 %v2477_v7, %v2446_v4 }
 0xc45   :  { %v2485_v11 = vadd.bf16 %v2473_v14, %v2445_v6 }
 0xc46   :  { %v2494_v12 = vmul.bf16 1009007652, %v2486_v10 }
 0xc47   :  { %v2493_v3 = vmul.bf16 1009007652, %v2485_v11  ;;  %3260 = vmatpush3.bf16.msra.mxu1 %v2500_v8 }
 0xc48   :  { %3261 = vmatprep.subr.bf16.mxu1 %v3463_v30  ;;  %v2502_v17 = vmax.bf16 %v2494_v12, %v2486_v10 }
 0xc49   :  { %v2501_v15 = vmax.bf16 %v2493_v3, %v2485_v11 }
 0xc4b   :  { %3262 = vmatpush3.bf16.msra.mxu1 %v2501_v15 }
 0xc4c   :  { %3263 = vmatprep.subr.bf16.mxu1 %v3463_v30 }
 0xc4f   :  { %3264 = vmatpush3.bf16.msra.mxu1 %v2502_v17 }
 0xc52   :  { %3266 = vmatmul.mubr.bf16.vlgmr.msra.gmra.mrb[20].mxu1 %v2503_v9 }
 0xd25   :  { %v2538_v18 = vpop.f32.mrb[20].mxu1 }
 0xd26   :  { %v2546_v27 = vadd.f32 %v2545_v29, %v2538_v18  ;;  %v3267_v19 = vpop.f32.mrb[21].mxu1  ;;  %v2550_v28 = vadd.f32 %v2549_v25, %v2538_v18 }
 0xd27   :  { %v2541_v20 = vpop.f32.mrb[22].mxu1 }
 0xd28   :  { %3417 = vtanh.f32 %v2546_v27  ;;  %v3268_v21 = vpop.f32.mrb[23].mxu1  ;;  %v2552_v31 = vrot.slane %v2550_v28, 1 }
 0xd2a   :  { %v2554_v33 = vsub.f32 %v4009_v50, %v2552_v31 }
 0xd32   :  { %v3418_v22 = vpop.eup %3417 }
 0xd33   :  { %v2555_v24 = vsub.f32 0.0, %v3418_v22  ;;  %v2559_v30 = vsub.f32 %v2141_v16, %v3418_v22 }
 0xd35   :  { %v2556_v26 = vmul.f32 1.442695, %v2555_v24 }
 0xd37   :  { %3419 = vpow2.f32 %v2556_v26 }
 0xd41   :  { %v3420_v34 = vpop.eup %3419 }
 0xd42   :  { %v2558_v35 = vmul.f32 %v3420_v34, %v2554_v33 }
 0xd44   :  { %v2560_v36 = vmul.f32 %v2558_v35, %v2558_v35 }
 0xd46   :  { %v2562_v39 = vadd.f32 %v2561_v38, %v2560_v36 }
 0xd48   :  { %v2563_v40 = vmul.f32 -0.5, %v2562_v39 }
 0xd4a   :  { %v2806_v2 = vadd.f32 -1.837877, %v2563_v40 }
 0xd4c   :  { %v2565_v37 = vadd.f32 %v2806_v2, %v2559_v30 }
 0xd4e   :  { %2566 = vst [vmem:[#allocation5] sm:$0x1] %v2565_v37 }
 0xd4f   :  { %3444 = shalt.err (!%p3441_p9)
}
 0xd50   :  { %s3445_s1 = scalar_lea.hbm %s4175_s5, 16 }
 0xd51   :  { %p3446_p10 = scmp.ne.s32.totalorder %s4175_s5, %s3445_s1  ;;  %p3449_p11 = scmp.lt.u32.totalorder %s3445_s1, %s4175_s5 }
 0xd53   :  { %p3451_p12 = pnand %p3449_p11, %p3446_p10 }
 0xd55   :  { %3454 = shalt.err (!%p3451_p12)
}
 0xd56   :  { %2576 = dma.vmem_to_hbm [thread:$0]  %s2574_s16, 16, %s4175_s5, [#allocation3]  }
 0xd57   :  { %3457 = dma.done.wait [#allocation3], 16  }
 0xd58   :  { %3458 = vsyncadd [#allocation3], 4294967280 }
 0xd59   :  { %2580 = vsyncpa [#allocation3], 1 }
 0xd5a   :  { %2581 = vsyncpa [#allocation4], 1 }

</bundles_post_ra>
